<compile_context>
chip_gen: v7x
topology: tpu7x:2x2x1
jax: 0.10.0
libtpu: 0.0.40
codegen_flags: <defaults>
</compile_context>

<pallas_src>
import functools

import numpy as np
import jax
import jax.numpy as jnp
from jax import lax
from jax.experimental import pallas as pl
from jax.experimental.pallas import tpu as pltpu


# ----------------------------------------------------------------------------
# Kernel
# ----------------------------------------------------------------------------
def _conv_block_kernel(x_ref, w_ref, scale_ref, shift_ref, o_ref, *,
                       kernel_size, stride, out_h, out_w, negative_slope,
                       apply_activation, deep_contraction):
    """One (H-strip, Cout-tile) step: conv -> folded-BN -> LeakyReLU."""
    cin = x_ref.shape[-1]
    co = o_ref.shape[-1]

    def tap(kh, kw):
        if stride == 1:
            return x_ref[kh:kh + out_h, kw:kw + out_w, :]
        # TODO(synk): strided sublane reads; space-to-batch in the wrapper
        # would make these unit-stride.
        return x_ref[pl.ds(kh, out_h, stride=stride),
                     pl.ds(kw, out_w, stride=stride), :]

    if deep_contraction:
        # Concatenate the K*K taps along the lane (channel) axis and run a
        # single deep MXU contraction over K*K*Cin (f32 accumulation).
        kkc = kernel_size * kernel_size * cin
        patch = jnp.concatenate(
            [tap(kh, kw)
             for kh in range(kernel_size) for kw in range(kernel_size)],
            axis=-1)                                       # (tho, Wo, K*K*Cin)
        acc = jnp.dot(patch.reshape(out_h * out_w, kkc), w_ref[...],
                      preferred_element_type=jnp.float32)  # (tho*Wo, co) f32
    else:
        # Cin already fills the MXU K-depth; per-tap matmuls, f32 accumulation.
        acc = jnp.zeros((out_h * out_w, co), jnp.float32)
        for kh in range(kernel_size):
            for kw in range(kernel_size):
                acc = acc + jnp.dot(tap(kh, kw).reshape(out_h * out_w, cin),
                                    w_ref[kh, kw, :, :],
                                    preferred_element_type=jnp.float32)

    # BatchNorm folded into per-channel scale/shift (lane broadcast), LeakyReLU.
    y = acc * scale_ref[...] + shift_ref[...]              # (HW, co) * (1, co)
    if apply_activation:
        y = jnp.where(y >= 0.0, y, negative_slope * y)
    o_ref[...] = y.reshape(out_h, out_w, co).astype(o_ref.dtype)


# ----------------------------------------------------------------------------
# Tiling heuristics
# ----------------------------------------------------------------------------
def _round_up(a, b):
    return (a + b - 1) // b * b


def _block_bytes(lead, sub, lanes, itemsize):
    """Approximate VMEM bytes of a (lead, sub, lanes) block with (8,128) tiling."""
    return lead * _round_up(max(sub, 1), 8) * _round_up(max(lanes, 1), 128) * itemsize


def _working_set_bytes(tile_ho, Wp, Wo, Cin, K, tile_co, stride, deep):
    tile_hi = (tile_ho - 1) * stride + K
    kkc = K * K * Cin
    in_b = _block_bytes(tile_hi, Wp, Cin, 2)                    # bf16 strip
    if deep:
        w_b = _block_bytes(1, kkc, tile_co, 2)
        im2col_b = _block_bytes(tile_ho, Wo, kkc, 2)            # concat temp
    else:
        w_b = _block_bytes(K * K, Cin, tile_co, 2)
        im2col_b = 0
    out_b = _block_bytes(tile_ho, Wo, tile_co, 4)               # f32 out block
    acc_b = _block_bytes(1, tile_ho * Wo, tile_co, 4)           # f32 acc
    # in/w/out blocks are double-buffered by the BlockSpec pipeline.
    return 2 * (in_b + w_b + out_b) + im2col_b + acc_b


def _pick_tile_ho(Ho, Wp, Wo, Cin, K, tile_co, stride, deep,
                  budget=8 * 1024 * 1024):
    th = Ho
    while th > 8 and _working_set_bytes(th, Wp, Wo, Cin, K, tile_co,
                                        stride, deep) > budget:
        th = (th + 1) // 2
    return max(1, th)


# ----------------------------------------------------------------------------
# Wrapper
# ----------------------------------------------------------------------------
def conv_block_forward(x, weight, gamma, beta, running_mean, running_var, *,
                       stride=1, padding=0, eps=1e-5, negative_slope=0.1,
                       activation=True, tile_ho=None,
                       compute_dtype=jnp.bfloat16):
    """ConvBlock forward.

    x:      (N, Cin, H, W)    NCHW (PyTorch layout)
    weight: (Cout, Cin, K, K) OIHW (PyTorch layout, bias=False)
    gamma/beta/running_mean/running_var: (Cout,) BatchNorm2d parameters.
    Returns (N, Cout, Ho, Wo) in NCHW, float32.
    """
    N, Cin, H, W = x.shape
    Cout, _, K, _ = weight.shape
    Ho = (H + 2 * padding - K) // stride + 1
    Wo = (W + 2 * padding - K) // stride + 1
    Wp = W + 2 * padding

    # ---- BatchNorm fold (inference form), f32 epilogue params -------------
    scale = (gamma.astype(jnp.float32)
             / jnp.sqrt(running_var.astype(jnp.float32) + eps))
    shift = beta.astype(jnp.float32) - running_mean.astype(jnp.float32) * scale
    scale2 = scale.reshape(1, Cout)
    shift2 = shift.reshape(1, Cout)

    # ---- Cout tiling: fill the 256-wide v6e/v7x MXU where possible --------
    if Cout % 256 == 0:
        tile_co = 256
    elif Cout % 128 == 0:
        tile_co = 128
    else:
        tile_co = Cout              # small Cout: single (lane-padded) tile
    n_co = Cout // tile_co

    # Deep contraction only pays when Cin underfills the MXU K-depth.
    deep = (Cin < 128) and (K * K * Cin <= 2048)
    kkc = K * K * Cin

    # ---- output-H tiling (halo strips) -------------------------------------
    if tile_ho is None:
        tile_ho = _pick_tile_ho(Ho, Wp, Wo, Cin, K, tile_co, stride, deep)
        if N == 1 and n_co == 1 and tile_ho >= Ho and Ho > 1:
            # Expose a second parallel grid axis for the v7x megacore at batch 1.
            tile_ho = (Ho + 1) // 2
    tile_ho = max(1, min(int(tile_ho), Ho))
    n_h = -(-Ho // tile_ho)
    tile_hi = (tile_ho - 1) * stride + K

    # ---- layout glue: NCHW->NHWC bf16, spatial pad, overlapping H-strips ---
    x_nhwc = jnp.transpose(x, (0, 2, 3, 1)).astype(compute_dtype)
    h_needed = (n_h * tile_ho - 1) * stride + K
    pad_h_hi = max(padding, h_needed - H - padding)
    x_pad = jnp.pad(x_nhwc, ((0, 0), (padding, pad_h_hi),
                             (padding, padding), (0, 0)))
    strips = jnp.stack(
        [x_pad[:, h * tile_ho * stride:h * tile_ho * stride + tile_hi]
         for h in range(n_h)], axis=1)              # (N, n_h, tile_hi, Wp, Cin)
    strips = strips.reshape(N * n_h, tile_hi, Wp, Cin)

    w_hwio = jnp.transpose(weight, (2, 3, 1, 0)).astype(compute_dtype)
    if deep:
        w_mat = w_hwio.reshape(kkc, Cout)
        w_spec = pl.BlockSpec((kkc, tile_co), lambda b, j: (0, j))
    else:
        w_mat = w_hwio
        w_spec = pl.BlockSpec((K, K, Cin, tile_co), lambda b, j: (0, 0, 0, j))

    ws = _working_set_bytes(tile_ho, Wp, Wo, Cin, K, tile_co, stride, deep)
    vmem_limit = int(min(max(2 * ws, 32 * 1024 * 1024), 48 * 1024 * 1024))

    kernel = functools.partial(
        _conv_block_kernel, kernel_size=K, stride=stride, out_h=tile_ho,
        out_w=Wo, negative_slope=negative_slope, apply_activation=activation,
        deep_contraction=deep)

    y = pl.pallas_call(
        kernel,
        out_shape=jax.ShapeDtypeStruct((N * n_h, tile_ho, Wo, Cout),
                                       jnp.float32),
        grid=(N * n_h, n_co),
        in_specs=[
            pl.BlockSpec((None, tile_hi, Wp, Cin), lambda b, j: (b, 0, 0, 0)),
            w_spec,
            pl.BlockSpec((1, tile_co), lambda b, j: (0, j)),
            pl.BlockSpec((1, tile_co), lambda b, j: (0, j)),
        ],
        out_specs=pl.BlockSpec((None, tile_ho, Wo, tile_co),
                               lambda b, j: (b, 0, 0, j)),
        compiler_params=pltpu.CompilerParams(
            dimension_semantics=("parallel", "parallel"),
            vmem_limit_bytes=vmem_limit),
    )(strips, w_mat, scale2, shift2)

    y = y.reshape(N, n_h * tile_ho, Wo, Cout)[:, :Ho]
    return jnp.transpose(y, (0, 3, 1, 2))


# ----------------------------------------------------------------------------
# Pure-JAX reference (f32, HIGHEST precision) for verification
# ----------------------------------------------------------------------------
def conv_block_ref(x, weight, gamma, beta, running_mean, running_var, *,
                   stride, padding, eps=1e-5, negative_slope=0.1,
                   activation=True):
    y = lax.conv_general_dilated(
        x.astype(jnp.float32), weight.astype(jnp.float32),
        window_strides=(stride, stride),
        padding=((padding, padding), (padding, padding)),
        dimension_numbers=("NCHW", "OIHW", "NCHW"),
        precision=lax.Precision.HIGHEST)
    scale = gamma / jnp.sqrt(running_var + eps)
    shift = beta - running_mean * scale
    y = y * scale[None, :, None, None] + shift[None, :, None, None]
    if activation:
        y = jnp.where(y >= 0.0, y, negative_slope * y)
    return y


if __name__ == "__main__":
    key = jax.random.PRNGKey(0)
    B, Cin, H, W = 2, 4, 16, 16
    Cout, K, S, P = 32, 3, 1, 1

    ks = jax.random.split(key, 6)
    x = jax.random.normal(ks[0], (B, Cin, H, W), jnp.float32)
    weight = jax.random.normal(ks[1], (Cout, Cin, K, K), jnp.float32) * 0.1
    gamma = 1.0 + 0.1 * jax.random.normal(ks[2], (Cout,), jnp.float32)
    beta = 0.1 * jax.random.normal(ks[3], (Cout,), jnp.float32)
    running_mean = 0.1 * jax.random.normal(ks[4], (Cout,), jnp.float32)
    running_var = jax.random.uniform(ks[5], (Cout,), jnp.float32,
                                     minval=0.5, maxval=1.5)

    ref = conv_block_ref(x, weight, gamma, beta, running_mean, running_var,
                         stride=S, padding=P, activation=True)

    # bf16 MXU operands with f32 accumulation -> compare against the f32
    # reference with a bf16-appropriate tolerance.
    TOL = dict(rtol=2e-2, atol=2e-2)

    # 1) default tiling (single H-strip at this size)
    out = conv_block_forward(x, weight, gamma, beta, running_mean, running_var,
                             stride=S, padding=P, activation=True)
    out = jax.block_until_ready(out)
    np.testing.assert_allclose(np.asarray(out), np.asarray(ref), **TOL)

    # 2) forced small H-tile to exercise the halo'd multi-strip path
    out_tiled = conv_block_forward(x, weight, gamma, beta, running_mean,
                                   running_var, stride=S, padding=P,
                                   activation=True, tile_ho=8)
    out_tiled = jax.block_until_ready(out_tiled)
    np.testing.assert_allclose(np.asarray(out_tiled), np.asarray(ref), **TOL)

    # 3) activation=False path of the module
    out_noact = conv_block_forward(x, weight, gamma, beta, running_mean,
                                   running_var, stride=S, padding=P,
                                   activation=False)
    out_noact = jax.block_until_ready(out_noact)
    ref_noact = conv_block_ref(x, weight, gamma, beta, running_mean,
                               running_var, stride=S, padding=P,
                               activation=False)
    np.testing.assert_allclose(np.asarray(out_noact), np.asarray(ref_noact),
                               **TOL)

    print("KERNEL_OK")
</pallas_src>

<mosaic_0001>
module attributes {stable_mosaic.version = 11 : i64} {
  func.func @_conv_block_kernel(%arg0: i32, %arg1: i32, %arg2: memref<1x18x18x4xbf16, #tpu.memory_space<vmem>>, %arg3: memref<36x32xbf16, #tpu.memory_space<vmem>>, %arg4: memref<1x32xf32, #tpu.memory_space<vmem>>, %arg5: memref<1x32xf32, #tpu.memory_space<vmem>>, %arg6: memref<1x16x16x32xf32, #tpu.memory_space<vmem>>) attributes {dimension_semantics = [#tpu.dimension_semantics<parallel>, #tpu.dimension_semantics<parallel>], iteration_bounds = array<i64: 2, 1>, scalar_prefetch = 0 : i64, scratch_operands = 0 : i64, tpu.core_type = #tpu.core_type<tc>, window_params = [{transform_indices = @transform_0, window_bounds = array<i64: 1, 18, 18, 4>}, {transform_indices = @transform_1, window_bounds = array<i64: 36, 32>}, {transform_indices = @transform_2, window_bounds = array<i64: 1, 32>}, {transform_indices = @transform_3, window_bounds = array<i64: 1, 32>}, {transform_indices = @transform_4, window_bounds = array<i64: 1, 16, 16, 32>}]} {
    %c0 = arith.constant 0 : index
    %c0_0 = arith.constant 0 : index
    %c0_1 = arith.constant 0 : index
    %c0_2 = arith.constant 0 : index
    %0 = vector.load %arg2[%c0, %c0_0, %c0_1, %c0_2] : memref<1x18x18x4xbf16, #tpu.memory_space<vmem>>, vector<1x16x16x4xbf16>
    %1 = vector.shape_cast %0 : vector<1x16x16x4xbf16> to vector<16x16x4xbf16>
    %c0_3 = arith.constant 0 : index
    %c0_4 = arith.constant 0 : index
    %c1 = arith.constant 1 : index
    %c0_5 = arith.constant 0 : index
    %2 = vector.load %arg2[%c0_3, %c0_4, %c1, %c0_5] : memref<1x18x18x4xbf16, #tpu.memory_space<vmem>>, vector<1x16x16x4xbf16>
    %3 = vector.shape_cast %2 : vector<1x16x16x4xbf16> to vector<16x16x4xbf16>
    %c0_6 = arith.constant 0 : index
    %c0_7 = arith.constant 0 : index
    %c2 = arith.constant 2 : index
    %c0_8 = arith.constant 0 : index
    %4 = vector.load %arg2[%c0_6, %c0_7, %c2, %c0_8] : memref<1x18x18x4xbf16, #tpu.memory_space<vmem>>, vector<1x16x16x4xbf16>
    %5 = vector.shape_cast %4 : vector<1x16x16x4xbf16> to vector<16x16x4xbf16>
    %c0_9 = arith.constant 0 : index
    %c1_10 = arith.constant 1 : index
    %c0_11 = arith.constant 0 : index
    %c0_12 = arith.constant 0 : index
    %6 = vector.load %arg2[%c0_9, %c1_10, %c0_11, %c0_12] : memref<1x18x18x4xbf16, #tpu.memory_space<vmem>>, vector<1x16x16x4xbf16>
    %7 = vector.shape_cast %6 : vector<1x16x16x4xbf16> to vector<16x16x4xbf16>
    %c0_13 = arith.constant 0 : index
    %c1_14 = arith.constant 1 : index
    %c1_15 = arith.constant 1 : index
    %c0_16 = arith.constant 0 : index
    %8 = vector.load %arg2[%c0_13, %c1_14, %c1_15, %c0_16] : memref<1x18x18x4xbf16, #tpu.memory_space<vmem>>, vector<1x16x16x4xbf16>
    %9 = vector.shape_cast %8 : vector<1x16x16x4xbf16> to vector<16x16x4xbf16>
    %c0_17 = arith.constant 0 : index
    %c1_18 = arith.constant 1 : index
    %c2_19 = arith.constant 2 : index
    %c0_20 = arith.constant 0 : index
    %10 = vector.load %arg2[%c0_17, %c1_18, %c2_19, %c0_20] : memref<1x18x18x4xbf16, #tpu.memory_space<vmem>>, vector<1x16x16x4xbf16>
    %11 = vector.shape_cast %10 : vector<1x16x16x4xbf16> to vector<16x16x4xbf16>
    %c0_21 = arith.constant 0 : index
    %c2_22 = arith.constant 2 : index
    %c0_23 = arith.constant 0 : index
    %c0_24 = arith.constant 0 : index
    %12 = vector.load %arg2[%c0_21, %c2_22, %c0_23, %c0_24] : memref<1x18x18x4xbf16, #tpu.memory_space<vmem>>, vector<1x16x16x4xbf16>
    %13 = vector.shape_cast %12 : vector<1x16x16x4xbf16> to vector<16x16x4xbf16>
    %c0_25 = arith.constant 0 : index
    %c2_26 = arith.constant 2 : index
    %c1_27 = arith.constant 1 : index
    %c0_28 = arith.constant 0 : index
    %14 = vector.load %arg2[%c0_25, %c2_26, %c1_27, %c0_28] : memref<1x18x18x4xbf16, #tpu.memory_space<vmem>>, vector<1x16x16x4xbf16>
    %15 = vector.shape_cast %14 : vector<1x16x16x4xbf16> to vector<16x16x4xbf16>
    %c0_29 = arith.constant 0 : index
    %c2_30 = arith.constant 2 : index
    %c2_31 = arith.constant 2 : index
    %c0_32 = arith.constant 0 : index
    %16 = vector.load %arg2[%c0_29, %c2_30, %c2_31, %c0_32] : memref<1x18x18x4xbf16, #tpu.memory_space<vmem>>, vector<1x16x16x4xbf16>
    %17 = vector.shape_cast %16 : vector<1x16x16x4xbf16> to vector<16x16x4xbf16>
    %18 = tpu.concatenate %1, %3, %5, %7, %9, %11, %13, %15, %17 in 2 : vector<16x16x4xbf16>, vector<16x16x4xbf16>, vector<16x16x4xbf16>, vector<16x16x4xbf16>, vector<16x16x4xbf16>, vector<16x16x4xbf16>, vector<16x16x4xbf16>, vector<16x16x4xbf16>, vector<16x16x4xbf16> -> vector<16x16x36xbf16>
    %19 = vector.shape_cast %18 : vector<16x16x36xbf16> to vector<256x36xbf16>
    %c0_33 = arith.constant 0 : index
    %c0_34 = arith.constant 0 : index
    %20 = vector.load %arg3[%c0_33, %c0_34] : memref<36x32xbf16, #tpu.memory_space<vmem>>, vector<36x32xbf16>
    %cst = arith.constant dense<0.000000e+00> : vector<256x32xf32>
    %21 = tpu.matmul %19, %20, %cst {dimension_numbers = #tpu.dot_dimension_numbers<[1], [0], [0], [1], [0, 0, 1, 1], [], []>} : vector<256x36xbf16>, vector<36x32xbf16>, vector<256x32xf32> -> vector<256x32xf32>
    %c0_35 = arith.constant 0 : index
    %c0_36 = arith.constant 0 : index
    %22 = vector.load %arg4[%c0_35, %c0_36] : memref<1x32xf32, #tpu.memory_space<vmem>>, vector<1x32xf32>
    %23 = vector.broadcast %22 : vector<1x32xf32> to vector<256x32xf32>
    %24 = arith.mulf %21, %23 : vector<256x32xf32>
    %c0_37 = arith.constant 0 : index
    %c0_38 = arith.constant 0 : index
    %25 = vector.load %arg5[%c0_37, %c0_38] : memref<1x32xf32, #tpu.memory_space<vmem>>, vector<1x32xf32>
    %26 = vector.broadcast %25 : vector<1x32xf32> to vector<256x32xf32>
    %27 = arith.addf %24, %26 : vector<256x32xf32>
    %cst_39 = arith.constant 0.000000e+00 : f32
    %28 = vector.broadcast %cst_39 : f32 to vector<256x32xf32>
    %29 = arith.cmpf oge, %27, %28 : vector<256x32xf32>
    %cst_40 = arith.constant 1.000000e-01 : f32
    %30 = vector.broadcast %cst_40 : f32 to vector<256x32xf32>
    %31 = arith.mulf %30, %27 : vector<256x32xf32>
    %32 = arith.select %29, %27, %31 : vector<256x32xi1>, vector<256x32xf32>
    %33 = vector.shape_cast %32 : vector<256x32xf32> to vector<16x16x32xf32>
    %c0_41 = arith.constant 0 : index
    %c0_42 = arith.constant 0 : index
    %c0_43 = arith.constant 0 : index
    %c0_44 = arith.constant 0 : index
    %34 = vector.load %arg6[%c0_41, %c0_42, %c0_43, %c0_44] : memref<1x16x16x32xf32, #tpu.memory_space<vmem>>, vector<1x16x16x32xf32>
    %35 = vector.shape_cast %34 : vector<1x16x16x32xf32> to vector<16x16x32xf32>
    %36 = vector.shape_cast %33 : vector<16x16x32xf32> to vector<1x16x16x32xf32>
    tpu.vector_store %arg6[%c0_41, %c0_42, %c0_43, %c0_44], %36 {strides = array<i32>} : memref<1x16x16x32xf32, #tpu.memory_space<vmem>>, vector<1x16x16x32xf32>,
    return
  }
  func.func @transform_0(%arg0: i32, %arg1: i32) -> (i32, i32, i32, i32) {
    %c0_i32 = arith.constant 0 : i32
    %c0_i32_0 = arith.constant 0 : i32
    %c0_i32_1 = arith.constant 0 : i32
    %c0_i32_2 = arith.constant 0 : i32
    return %arg0, %c0_i32, %c0_i32_0, %c0_i32_1 : i32, i32, i32, i32
  }
  func.func @transform_1(%arg0: i32, %arg1: i32) -> (i32, i32) {
    %c0_i32 = arith.constant 0 : i32
    %c0_i32_0 = arith.constant 0 : i32
    return %c0_i32, %arg1 : i32, i32
  }
  func.func @transform_2(%arg0: i32, %arg1: i32) -> (i32, i32) {
    %c0_i32 = arith.constant 0 : i32
    %c0_i32_0 = arith.constant 0 : i32
    return %c0_i32, %arg1 : i32, i32
  }
  func.func @transform_3(%arg0: i32, %arg1: i32) -> (i32, i32) {
    %c0_i32 = arith.constant 0 : i32
    %c0_i32_0 = arith.constant 0 : i32
    return %c0_i32, %arg1 : i32, i32
  }
  func.func @transform_4(%arg0: i32, %arg1: i32) -> (i32, i32, i32, i32) {
    %c0_i32 = arith.constant 0 : i32
    %c0_i32_0 = arith.constant 0 : i32
    %c0_i32_1 = arith.constant 0 : i32
    return %arg0, %c0_i32, %c0_i32_0, %arg1 : i32, i32, i32, i32
  }
}

</mosaic_0001>

<bundles_post_ra>
// kernel: tpu_custom_call.1
= control target key start
LH: loop header
LB: loop body
LE: loop exit
PB: predicated region body
PF: predicated region fallthrough
CT: control target
= control target key end

     0   :  { %9 = vsyncpa [#allocation3], 0  ;;  %s4941_s0 = inlined_call_operand.vmem [shape: bf16[2,18,18,4], index: 0, kind: input, shape index: {}]   ;;  %s4942_s1 = inlined_call_operand.vmem [shape: bf16[36,32], index: 1, kind: input, shape index: {}]   ;;  %s4943_s2 = inlined_call_operand.vmem [shape: f32[1,32], index: 2, kind: input, shape index: {}]   ;;  %s4944_s3 = inlined_call_operand.vmem [shape: f32[1,32], index: 3, kind: input, shape index: {}]   ;;  %s4945_s4 = inlined_call_operand.hbm [shape: f32[2,16,16,32], index: 4, kind: output, shape index: {}]  }
   0x1   :  { %11 = vsyncpa [#allocation3 + $0x1], 0  ;;  %s3471_s15 = smov 0   ;;  %s3473_s16 = smov 0  }
   0x2   :  { %s3475_s17 = smov 0   ;;  %s3477_s18 = smov 0  }
   0x3   :  { %s3479_s19 = smov 0   ;;  %s3481_s20 = smov 0  }
   0x4 LB: > { %s2770_s21 = sadd.s32 4294967295, %s3434_s20   ;;  %s2771_s22 = sadd.s32 4294967294, %s3434_s20   ;;  %s3434_s20 = sphi %s3481_s20, %s17_s20   ;;  %s3430_s19 = sphi %s3479_s19, %s4964_s19   ;;  %s3426_s18 = sphi %s3477_s18, %s4963_s18   ;;  %s3422_s17 = sphi %s3475_s17, %s4962_s17   ;;  %s3418_s16 = sphi %s3473_s16, %s4961_s16   ;;  %s3414_s15 = sphi %s3471_s15, %s4960_s15  }
   0x5   : > { %s29_s23 = sadd.s32 1, %s3430_s19  ;;  %s142_s24 = sadd.s32 1, %s3422_s17 }
   0x6   : > { %p31_p0 = scmp.ge.s32.totalorder %s29_s23, 2  ;;  %p152_p1 = scmp.ne.s32.totalorder %s3422_s17, %s3418_s16 }
   0x7   : > { %p153_p2 = scmp.eq.s32.totalorder %s2770_s21, 1  ;;  %p158_p3 = scmp.ne.s32.totalorder %s3418_s16, %s3414_s15 }
   0x8   : > { %s4966_s23 = smov (%p31_p0, %s29_s23), 0  ;;  %p159_p5 = scmp.eq.s32.totalorder %s2771_s22, 1 }
   0x9   : > { %p3511_p4 = por %p153_p2, %p152_p1  ;;  %s137_s26 = ssub.s32 %s3430_s19, %s4966_s23 }
   0xa   : > { %p2777_p6 = scmp.ge.s32.totalorder %s3434_s20, 1  ;;  %p140_p7 = scmp.eq.s32.totalorder %s137_s26, 0 }
   0xb   : > { %p3518_p8 = por %p159_p5, %p158_p3  ;;  %p204_p9 = scmp.lt.s32.totalorder %s3434_s20, 3 }
   0xc   : > { %s3524_s28 = scalar_select %p140_p7, %s3422_s17, %s142_s24  }
   0xd   : > { %p205_p10 = pnand %p2777_p6, %p204_p9 }
   0xf   : > { %208 = sbr.rel (%p205_p10) target bundleno = 644 (0x284), region = 36 }
  0x16   : > { %p240_p11 = scmp.lt.s32.totalorder %s3426_s18, 1  ;;  %s3436_s8 = smov 12   ;;  %vm851_vm0 = vcmask 1046528   ;;  %vm578_vm1 = vsmask.f32 7424  ;;  %vm2273_vm2 = vcmask 1041408  }
  0x17   : > { %s3437_s9 = smov 8   ;;  %s3438_s10 = smov 4   ;;  %vm1956_vm3 = vcmask 31744   ;;  %vm1989_vm4 = vcmask 64512   ;;  %vm2022_vm5 = vcmask 97280   ;;  %vm2055_vm6 = vcmask 130048  }
  0x18   : > { %s241_s29 = scalar_select %p240_p11, %s3426_s18, 1  ;;  %vm2088_vm7 = vcmask 162816   ;;  %vm2121_vm8 = vcmask 195584   ;;  %vm2154_vm9 = vcmask 228352   ;;  %vm2187_vm10 = vcmask 261120  }
  0x19   : > { %s3439_s11 = smov 16   ;;  %s3440_s12 = smov 20   ;;  %vm2240_vm11 = vcmask 293888  }
  0x1a   : > { %s3144_s30 = smul.u32 216, %s241_s29  ;;  %s3441_s21 = smov 24  }
  0x1b   : > { %s3442_s26 = smov 28   ;;  %s3443_s29 = smov 32  }
  0x1c   : > { %s3531_s7 = scalar_lea.vmem %s4941_s0, %s3144_s30  ;;  %s3078_s14 = sshll.u32 %s3426_s18, 12 }
  0x1d   : > { %v2796_v0 = vld [vmem:[%s3531_s7 + $0x6c] sm:$0xf]  ;;  %v3535_v1 = vld [vmem:[%s3531_s7 + $0x70] sm:$0xf]  ;;  %v273_v6 = vld [vmem:[%s3531_s7 + $0x64] sm:$0xf] }
  0x1e   : > { %v3538_v2 = vcombine.low %v2796_v0, %v3535_v1  ;;  %v2780_v3 = vld [vmem:[%s3531_s7 + $0xc] sm:$0xf]  ;;  %v3542_v4 = vld [vmem:[%s3531_s7 + $0x10] sm:$0xf]  ;;  %v312_v7 = vld [vmem:[%s3531_s7 + $0x60] sm:$0xe] }
  0x1f   : > { %v3545_v5 = vcombine.low %v2780_v3, %v3542_v4  ;;  %v3552_v8 = vld [vmem:[%s3531_s7 + $0x68] ss:$0 sps:$4 sm:$0x11]   ;;  %v2948_v9 = vcombine.low %v312_v7, %v273_v6  ;;  %v272_v10 = vld [vmem:[%s3531_s7 + $0x60] sm:$0xf]  ;;  %s3444_s30 = smov [#allocation2]  }
  0x20   : > { %1028 = vrot.lane.b32.xlu1 %v3538_v2, %s3436_s8  ;;  %v1191_v11 = vshll.u32 %v3538_v2, 16  ;;  %v257_v12 = vld [vmem:[%s3531_s7 + $0x4] sm:$0xf]  ;;  %v877_v14 = vrot.slane %v3552_v8, 1  ;;  %v304_v15 = vld [vmem:[%s3531_s7] sm:$0xe]  ;;  %v3563_v18 = vcombine.low %v272_v10, %v273_v6 }
  0x21   : > { %1012 = vrot.lane.b32.xlu0 %v3545_v5, %s3436_s8  ;;  %v876_v13 = vrot.slane %v2948_v9, 1  ;;  %v256_v16 = vld [vmem:[%s3531_s7] sm:$0xf]  ;;  %v1095_v17 = vshll.u32 %v3545_v5, 16  ;;  %v2940_v20 = vcombine.low %v304_v15, %v257_v12  ;;  %v274_v21 = vld [vmem:[%s3531_s7 + $0x6c] sm:$0xf] }
  0x22   : > { %v3216_v19 = vld [vmem:[%s3531_s7 + $0x8] ss:$0 sps:$4 sm:$0x11]   ;;  %v3568_v23 = vcombine.low %v256_v16, %v257_v12  ;;  %v275_v24 = vld [vmem:[%s3531_s7 + $0x70] sm:$0xf]  ;;  %v676_v30 = vshrl.u32 %v3563_v18, 16 }
  0x23   : > { %v878_v22 = vsel %vm851_vm0, %v876_v13, %v877_v14  ;;  %v313_v25 = vld [vmem:[%s3531_s7 + $0x6c] sm:$0xe]  ;;  %v852_v26 = vrot.slane %v2940_v20, 1  ;;  %v853_v27 = vrot.slane %v3216_v19, 1  ;;  %v3575_v31 = vcombine.low %v274_v21, %v275_v24  ;;  %v259_v33 = vld [vmem:[%s3531_s7 + $0x10] sm:$0xf] }
  0x24   : > { %916 = vrot.lane.b32.xlu1 %v878_v22, %s3437_s9  ;;  %v3220_v28 = vld [vmem:[%s3531_s7 + $0x74] ss:$0 sps:$4 sm:$0x11]   ;;  %v2949_v29 = vcombine.low %v313_v25, %v275_v24  ;;  %v258_v32 = vld [vmem:[%s3531_s7 + $0xc] sm:$0xf]  ;;  %v580_v41 = vshrl.u32 %v3568_v23, 16 }
  0x25   : > { %v854_v34 = vsel %vm851_vm0, %v852_v26, %v853_v27  ;;  %v880_v36 = vrot.slane %v3220_v28, 1  ;;  %v305_v37 = vld [vmem:[%s3531_s7 + $0xc] sm:$0xe]  ;;  %v3581_v38 = vcombine.low %v258_v32, %v259_v33  ;;  %v3223_v39 = vld [vmem:[%s3531_s7 + $0x14] ss:$0 sps:$4 sm:$0x11]  }
  0x26   : > { %v879_v35 = vrot.slane %v2949_v29, 1  ;;  %900 = vrot.lane.b32.xlu0 %v854_v34, %s3437_s9  ;;  %v2941_v40 = vcombine.low %v305_v37, %v259_v33  ;;  %v582_v42 = vshll.u32 %v3568_v23, 16  ;;  %v587_v43 = vshll.u32 %v3216_v19, 16  ;;  %v2798_v52 = vld [vmem:[%s3531_s7 + $0x78] sm:$0xf]  ;;  %s3360_s5 = sshll.u32 %s3444_s30, 4  ;;  %s3361_s5 = int_to_ptr.vmem [resolvable:$false] %s3360_s5 }
  0x27   : > { %v592_v45 = vshrl.u32 %v3581_v38, 16  ;;  %v594_v46 = vshll.u32 %v3581_v38, 16  ;;  %v688_v47 = vshrl.u32 %v3575_v31, 16  ;;  %v856_v49 = vrot.slane %v3223_v39, 1  ;;  %v3595_v57 = vld [vmem:[%s3531_s7 + $0x7c] sm:$0xf] }
  0x28   : > { %v881_v44 = vsel %vm851_vm0, %v879_v35, %v880_v36  ;;  %v855_v48 = vrot.slane %v2941_v40, 1  ;;  %v599_v50 = vshll.u32 %v3223_v39, 16  ;;  %v584_v51 = vrot.slane %v582_v42, 1  ;;  %v2782_v62 = vld [vmem:[%s3531_s7 + $0x18] sm:$0xf]  ;;  %s3362_s6 = scalar_lea.vmem %s3361_s5, 8192 }
  0x29   : > { %918 = vrot.lane.b32.xlu1 %v881_v44, %s3437_s9  ;;  %v596_v53 = vrot.slane %v594_v46, 1  ;;  %v589_v54 = vrot.slane %v587_v43, 1  ;;  %v690_v55 = vshll.u32 %v3575_v31, 16  ;;  %v695_v56 = vshll.u32 %v3220_v28, 16  ;;  %v3601_v63 = vld [vmem:[%s3531_s7 + $0x1c] sm:$0xf] }
  0x2a   : > { %v857_v58 = vsel %vm851_vm0, %v855_v48, %v856_v49  ;;  %v601_v59 = vrot.slane %v599_v50, 1  ;;  %v585_v60 = vor.u32 %v584_v51, %v580_v41  ;;  %v678_v61 = vshll.u32 %v3563_v18, 16  ;;  %v3608_v13 = vld [vmem:[%s3531_s7 + $0x74] ss:$0 sps:$4 sm:$0x11]  }
  0x2b   : > { %902 = vrot.lane.b32.xlu0 %v857_v58, %s3437_s9  ;;  %v597_v0 = vor.u32 %v596_v53, %v592_v45  ;;  %v692_v3 = vrot.slane %v690_v55, 1  ;;  %v697_v6 = vrot.slane %v695_v56, 1  ;;  %v683_v7 = vshll.u32 %v3552_v8, 16  ;;  %v3613_v20 = vld [vmem:[%s3531_s7 + $0x14] ss:$0 sps:$4 sm:$0x11]  }
  0x2c   : > { %v590_v9 = vsel %vm578_vm1, %v585_v60, %v589_v54  ;;  %v680_v10 = vrot.slane %v678_v61, 1  ;;  %v2965_v12 = vcombine.low %v2798_v52, %v3595_v57  ;;  %v2957_v19 = vcombine.low %v2782_v62, %v3601_v63  ;;  %v3620_v24 = vld [vmem:[%s3531_s7 + $0x80] ss:$0 sps:$4 sm:$0x11]   ;;  %v2836_v40 = vld [vmem:[%s3531_s7 + $0x6c] sm:$0xe] }
  0x2d   : > { %v602_v14 = vsel %vm578_vm1, %v597_v0, %v601_v59  ;;  %v693_v15 = vor.u32 %v692_v3, %v688_v47  ;;  %v685_v16 = vrot.slane %v683_v7, 1  ;;  %v1189_v21 = vshrl.u32 %v3538_v2, 16  ;;  %v2828_v43 = vld [vmem:[%s3531_s7 + $0xc] sm:$0xe]  ;;  %v2837_v49 = vld [vmem:[%s3531_s7 + $0x78] sm:$0xe] }
  0x2e   : > { %773 = vrot.lane.b32.xlu1 %v602_v14, %s3438_s10  ;;  %v681_v8 = vor.u32 %v680_v10, %v676_v30  ;;  %v1193_v22 = vrot.slane %v1191_v11, 1  ;;  %v1203_v26 = vshll.u32 %v2965_v12, 16  ;;  %v1196_v27 = vshll.u32 %v3608_v13, 16  ;;  %v3631_v11 = vld [vmem:[%s3531_s7 + $0x20] ss:$0 sps:$4 sm:$0x11]  }
  0x2f   : > { %771 = vrot.lane.b32.xlu0 %v590_v9, %s3438_s10  ;;  %v698_v25 = vsel %vm578_vm1, %v693_v15, %v697_v6  ;;  %v1093_v28 = vshrl.u32 %v3545_v5, 16  ;;  %v1107_v30 = vshll.u32 %v2957_v19, 16  ;;  %v1097_v32 = vrot.slane %v1095_v17, 1  ;;  %v2829_v53 = vld [vmem:[%s3531_s7 + $0x18] sm:$0xe] }
  0x30   : > { %v686_v29 = vsel %vm578_vm1, %v681_v8, %v685_v16  ;;  %v1100_v2 = vshll.u32 %v3613_v20, 16  ;;  %v1194_v33 = vor.u32 %v1193_v22, %v1189_v21  ;;  %v1198_v34 = vrot.slane %v1196_v27, 1  ;;  %v2860_v54 = vld [vmem:[%s3531_s7 + $0x78] sm:$0xf]  ;;  %v3658_v60 = vld [vmem:[%s3531_s7 + $0x1c] sm:$0xf] }
  0x31   : > { %v1098_v35 = vor.u32 %v1097_v32, %v1093_v28  ;;  %v1201_v36 = vshrl.u32 %v2965_v12, 16  ;;  %v1205_v37 = vrot.slane %v1203_v26, 1  ;;  %v1208_v39 = vshll.u32 %v3620_v24, 16  ;;  %v2844_v55 = vld [vmem:[%s3531_s7 + $0x18] sm:$0xf] }
  0x32   : > { %789 = vrot.lane.b32.xlu1 %v698_v25, %s3438_s10  ;;  %v1102_v5 = vrot.slane %v1100_v2, 1  ;;  %v1105_v17 = vshrl.u32 %v2957_v19, 16  ;;  %v1109_v41 = vrot.slane %v1107_v30, 1  ;;  %v1112_v42 = vshll.u32 %v3631_v11, 16  ;;  %v2862_v7 = vld [vmem:[%s3531_s7 + $0x84] sm:$0xf] }
  0x33   : > { %787 = vrot.lane.b32.xlu0 %v686_v29, %s3438_s10  ;;  %v2996_v44 = vcombine.low %v2836_v40, %v3535_v1  ;;  %v1199_v45 = vsel %vm578_vm1, %v1194_v33, %v1198_v34  ;;  %v1206_v46 = vor.u32 %v1205_v37, %v1201_v36  ;;  %v1210_v47 = vrot.slane %v1208_v39, 1  ;;  %v3650_v1 = vld [vmem:[%s3531_s7 + $0x7c] sm:$0xf]  ;;  %v3668_v9 = vld [vmem:[%s3531_s7 + $0x88] sm:$0xf] }
  0x34   : > { %v2988_v48 = vcombine.low %v2828_v43, %v3542_v4  ;;  %v1103_v50 = vsel %vm578_vm1, %v1098_v35, %v1102_v5  ;;  %v1110_v51 = vor.u32 %v1109_v41, %v1105_v17  ;;  %v1114_v52 = vrot.slane %v1112_v42, 1  ;;  %v3675_v14 = vld [vmem:[%s3531_s7 + $0x28] sm:$0xf]  ;;  %v3681_v21 = vld [vmem:[%s3531_s7 + $0x80] ss:$0 sps:$4 sm:$0x11]  }
  0x35   : > { %v2997_v56 = vcombine.low %v2837_v49, %v3595_v57  ;;  %v1211_v4 = vsel %vm578_vm1, %v1206_v46, %v1210_v47  ;;  %v1388_v58 = vrot.slane %v2996_v44, 1  ;;  %v1389_v59 = vrot.slane %v3608_v13, 1  ;;  %v2846_v13 = vld [vmem:[%s3531_s7 + $0x24] sm:$0xf]  ;;  %v276_v37 = vld [vmem:[%s3531_s7 + $0x78] sm:$0xf] }
  0x36   : > { %1030 = vrot.lane.b32.xlu1 %v2965_v12, %s3436_s8  ;;  %v2989_v61 = vcombine.low %v2829_v53, %v3601_v63  ;;  %v1115_v62 = vsel %vm578_vm1, %v1110_v51, %v1114_v52  ;;  %v1364_v0 = vrot.slane %v2988_v48, 1  ;;  %v1365_v3 = vrot.slane %v3613_v20, 1  ;;  %v3688_v26 = vld [vmem:[%s3531_s7 + $0x20] ss:$0 sps:$4 sm:$0x11]  }
  0x37   : > { %1014 = vrot.lane.b32.xlu0 %v2957_v19, %s3436_s8  ;;  %v3012_v57 = vcombine.low %v2860_v54, %v3650_v1  ;;  %v3004_v6 = vcombine.low %v2844_v55, %v3658_v60  ;;  %v1390_v10 = vsel %vm851_vm0, %v1388_v58, %v1389_v59  ;;  %v1391_v63 = vrot.slane %v2997_v56, 1  ;;  %v3694_v34 = vld [vmem:[%s3531_s7 + $0x8c] ss:$0 sps:$4 sm:$0x11]   ;;  %v3703_v39 = vld [vmem:[%s3531_s7 + $0x7c] sm:$0xf] }
  0x38   : > { %v1392_v12 = vrot.slane %v3620_v24, 1  ;;  %v1366_v15 = vsel %vm851_vm0, %v1364_v0, %v1365_v3  ;;  %v1367_v16 = vrot.slane %v2989_v61, 1  ;;  %v1368_v19 = vrot.slane %v3631_v11, 1  ;;  %v3699_v36 = vld [vmem:[%s3531_s7 + $0x2c] ss:$0 sps:$4 sm:$0x11]  }
  0x39   : > { %v1703_v20 = vshll.u32 %v3012_v57, 16  ;;  %v3013_v8 = vcombine.low %v2862_v7, %v3668_v9  ;;  %v1607_v22 = vshll.u32 %v3004_v6, 16  ;;  %v3005_v24 = vcombine.low %v2846_v13, %v3675_v14  ;;  %v260_v40 = vld [vmem:[%s3531_s7 + $0x18] sm:$0xf]  ;;  %v3707_v17 = vld [vmem:[%s3531_s7 + $0x1c] sm:$0xf] }
  0x3a   : > { %1300 = vrot.lane.b32.xlu1 %v1199_v45, %s3439_s11  ;;  %v1393_v25 = vsel %vm851_vm0, %v1391_v63, %v1392_v12  ;;  %v1369_v27 = vsel %vm851_vm0, %v1367_v16, %v1368_v19  ;;  %v1701_v29 = vshrl.u32 %v3012_v57, 16  ;;  %v1708_v32 = vshll.u32 %v3681_v21, 16  ;;  %v3305_v41 = vld [vmem:[%s4942_s1] sm:$0xff]   ;;  %v2900_v42 = vld [vmem:[%s3531_s7 + $0x78] sm:$0xe]  ;;  %v3310_v56 = vld [vmem:[%s4942_s1 + $0x8] sm:$0xff]  }
  0x3b   : > { %1284 = vrot.lane.b32.xlu0 %v1103_v50, %s3439_s11  ;;  %v1715_v28 = vshll.u32 %v3013_v8, 16  ;;  %v1705_v30 = vrot.slane %v1703_v20, 1  ;;  %v1619_v2 = vshll.u32 %v3005_v24, 16  ;;  %v1605_v11 = vshrl.u32 %v3004_v6, 16  ;;  %v2892_v47 = vld [vmem:[%s3531_s7 + $0x18] sm:$0xe]  ;;  %3098 = vmatprep.subr.bf16.mxu0 %v3305_v41 }
  0x3c   : > { %v1609_v33 = vrot.slane %v1607_v22, 1  ;;  %v1612_v35 = vshll.u32 %v3688_v26, 16  ;;  %v1710_v43 = vrot.slane %v1708_v32, 1  ;;  %v1713_v44 = vshrl.u32 %v3013_v8, 16  ;;  %3136 = vmatprep.subr.bf16.mxu1 %v3305_v41  ;;  %3099 = vmatpush3.bf16.msra.mxu0 %v3305_v41  ;;  %v278_v7 = vld [vmem:[%s3531_s7 + $0x84] sm:$0xf] }
  0x3d   : > { %v1706_v5 = vor.u32 %v1705_v30, %v1701_v29  ;;  %v1717_v45 = vrot.slane %v1715_v28, 1  ;;  %v1720_v46 = vshll.u32 %v3694_v34, 16  ;;  %v1617_v48 = vshrl.u32 %v3005_v24, 16  ;;  %3139 = vmatpush3.bf16.msra.mxu1 %v3305_v41  ;;  %v3731_v61 = vld [vmem:[%s3531_s7 + $0x80] ss:$0 sps:$4 sm:$0x11]   ;;  %3100 = vmatprep.subr.bf16.mxu0 %v3310_v56 }
  0x3e   : > { %1302 = vrot.lane.b32.xlu1 %v1211_v4, %s3439_s11  ;;  %v1621_v49 = vrot.slane %v1619_v2, 1  ;;  %v1624_v50 = vshll.u32 %v3699_v36, 16  ;;  %v3719_v51 = vcombine.low %v276_v37, %v3703_v39  ;;  %v1610_v52 = vor.u32 %v1609_v33, %v1605_v11  ;;  %3137 = vmatprep.subr.bf16.mxu1 %v3310_v56  ;;  %v262_v13 = vld [vmem:[%s3531_s7 + $0x24] sm:$0xf] }
  0x3f   : > { %1286 = vrot.lane.b32.xlu0 %v1115_v62, %s3439_s11  ;;  %v1614_v53 = vrot.slane %v1612_v35, 1  ;;  %v3722_v54 = vcombine.low %v260_v40, %v3707_v17  ;;  %v3044_v55 = vcombine.low %v2900_v42, %v3650_v1  ;;  %v3036_v4 = vcombine.low %v2892_v47, %v3658_v60  ;;  %v2901_v16 = vld [vmem:[%s3531_s7 + $0x84] sm:$0xe]  ;;  %v3773_v40 = vld [vmem:[%s3531_s7 + $0x8c] ss:$0 sps:$4 sm:$0x11]  }
  0x40   : > { %v1718_v58 = vor.u32 %v1717_v45, %v1713_v44  ;;  %v1722_v59 = vrot.slane %v1720_v46, 1  ;;  %v1711_v1 = vsel %vm578_vm1, %v1706_v5, %v1710_v43  ;;  %v1622_v62 = vor.u32 %v1621_v49, %v1617_v48  ;;  %3101 = vmatpush3.bf16.msra.mxu0 %v3310_v56 }
  0x41   : > { %v1626_v0 = vrot.slane %v1624_v50, 1  ;;  %v702_v3 = vshll.u32 %v3719_v51, 16  ;;  %v1615_v60 = vsel %vm578_vm1, %v1610_v52, %v1614_v53  ;;  %v1900_v63 = vrot.slane %v3044_v55, 1  ;;  %3140 = vmatpush3.bf16.msra.mxu1 %v3310_v56  ;;  %v314_v53 = vld [vmem:[%s3531_s7 + $0x78] sm:$0xe] }
  0x42   : > { %1428 = vrot.lane.b32.xlu1 %v1390_v10, %s3440_s12  ;;  %v3743_v10 = vld [vmem:[%s3531_s7 + $0x88] sm:$0xf]  ;;  %v1901_v12 = vrot.slane %v3681_v21, 1  ;;  %v1723_v19 = vsel %vm578_vm1, %v1718_v58, %v1722_v59  ;;  %v1876_v20 = vrot.slane %v3036_v4, 1  ;;  %v707_v22 = vshll.u32 %v3731_v61, 16 }
  0x43   : > { %1412 = vrot.lane.b32.xlu0 %v1366_v15, %s3440_s12  ;;  %v3748_v15 = vld [vmem:[%s3531_s7 + $0x28] sm:$0xf]  ;;  %v1627_v21 = vsel %vm578_vm1, %v1622_v62, %v1626_v0  ;;  %v3760_v28 = vcombine.low %v278_v7, %v3743_v10  ;;  %v604_v29 = vshrl.u32 %v3722_v54, 16  ;;  %v3045_v2 = vcombine.low %v2901_v16, %v3668_v9  ;;  %v3778_v9 = vld [vmem:[%s3531_s7 + $0x2c] ss:$0 sps:$4 sm:$0x11]  }
  0x44   : > { %v3765_v32 = vcombine.low %v262_v13, %v3748_v15  ;;  %v709_v33 = vrot.slane %v707_v22, 1  ;;  %v1902_v35 = vsel %vm851_vm0, %v1900_v63, %v1901_v12  ;;  %v1904_v45 = vrot.slane %v3694_v34, 1  ;;  %v307_v63 = vld [vmem:[%s3531_s7 + $0x24] sm:$0xe] }
  0x45   : > { %v714_v5 = vshll.u32 %v3760_v28, 16  ;;  %v1903_v44 = vrot.slane %v3045_v2, 1  ;;  %v1880_v47 = vrot.slane %v3699_v36, 1  ;;  %v712_v49 = vshrl.u32 %v3760_v28, 16  ;;  %v306_v36 = vld [vmem:[%s3531_s7 + $0x18] sm:$0xe] }
  0x46   : > { %1430 = vrot.lane.b32.xlu1 %v1393_v25, %s3440_s12  ;;  %v700_v25 = vshrl.u32 %v3719_v51, 16  ;;  %v719_v52 = vshll.u32 %v3773_v40, 16  ;;  %v616_v56 = vshrl.u32 %v3765_v32, 16  ;;  %v623_v4 = vshll.u32 %v3778_v9, 16 }
  0x47   : > { %1414 = vrot.lane.b32.xlu0 %v1369_v27, %s3440_s12  ;;  %v704_v27 = vrot.slane %v702_v3, 1  ;;  %v716_v50 = vrot.slane %v714_v5, 1  ;;  %v1905_v58 = vsel %vm851_vm0, %v1903_v44, %v1904_v45  ;;  %v2950_v62 = vcombine.low %v314_v53, %v3703_v39  ;;  %v315_v3 = vld [vmem:[%s3531_s7 + $0x84] sm:$0xe] }
  0x48   : > { %v2942_v0 = vcombine.low %v306_v36, %v3707_v17  ;;  %v625_v7 = vrot.slane %v623_v4, 1  ;;  %v883_v12 = vrot.slane %v3731_v61, 1  ;;  %v2951_v16 = vcombine.low %v315_v3, %v3743_v10 }
  0x49   : > { %v705_v37 = vor.u32 %v704_v27, %v700_v25  ;;  %v717_v59 = vor.u32 %v716_v50, %v712_v49  ;;  %v882_v17 = vrot.slane %v2950_v62, 1  ;;  %v2943_v61 = vcombine.low %v307_v63, %v3748_v15  ;;  %v3825_v15 = vld [vmem:[%s3531_s7 + $0x94] sm:$0xf]  ;;  %v2830_v62 = vld [vmem:[%s3531_s7 + $0x24] sm:$0xe] }
  0x4a   : > { %1540 = vrot.lane.b32.xlu1 %v3012_v57, %s3441_s21  ;;  %v3737_v57 = vld [vmem:[%s3531_s7 + $0x20] ss:$0 sps:$4 sm:$0x11]   ;;  %v885_v10 = vrot.slane %v2951_v16, 1 }
  0x4b   : > { %1524 = vrot.lane.b32.xlu0 %v3004_v6, %s3441_s21  ;;  %v606_v6 = vshll.u32 %v3722_v54, 16  ;;  %v710_v48 = vsel %vm578_vm1, %v705_v37, %v709_v33  ;;  %v859_v13 = vrot.slane %v3737_v57, 1  ;;  %v884_v27 = vsel %vm851_vm0, %v882_v17, %v883_v12  ;;  %v2786_v33 = vld [vmem:[%s3531_s7 + $0x30] sm:$0xf] }
  0x4c   : > { %v861_v2 = vrot.slane %v2943_v61, 1  ;;  %v2839_v12 = vld [vmem:[%s3531_s7 + $0x90] sm:$0xe] }
  0x4d   : > { %v608_v30 = vrot.slane %v606_v6, 1  ;;  %v2999_v61 = vcombine.low %v2839_v12, %v3825_v15 }
  0x4e   : > { %1542 = vrot.lane.b32.xlu1 %v3013_v8, %s3441_s21  ;;  %v1877_v8 = vrot.slane %v3688_v26, 1  ;;  %v611_v26 = vshll.u32 %v3737_v57, 16  ;;  %v2784_v57 = vld [vmem:[%s3531_s7 + $0x24] sm:$0xf] }
  0x4f   : > { %1526 = vrot.lane.b32.xlu0 %v3005_v24, %s3441_s21  ;;  %v2893_v24 = vld [vmem:[%s3531_s7 + $0x24] sm:$0xe]  ;;  %v609_v42 = vor.u32 %v608_v30, %v604_v29  ;;  %v2802_v30 = vld [vmem:[%s3531_s7 + $0x90] sm:$0xf] }
  0x50   : > { %v3037_v11 = vcombine.low %v2893_v24, %v3675_v14  ;;  %v1878_v41 = vsel %vm851_vm0, %v1876_v20, %v1877_v8  ;;  %v613_v43 = vrot.slane %v611_v26, 1  ;;  %v618_v14 = vshll.u32 %v3765_v32, 16  ;;  %v2800_v20 = vld [vmem:[%s3531_s7 + $0x84] sm:$0xf]  ;;  %v3809_v8 = vld [vmem:[%s3531_s7 + $0x88] sm:$0xf] }
  0x51   : > { %v3815_v24 = vld [vmem:[%s3531_s7 + $0x28] sm:$0xf]  ;;  %v2966_v25 = vcombine.low %v2800_v20, %v3809_v8 }
  0x52   : > { %1812 = vrot.lane.b32.xlu1 %v1711_v1, %s3442_s26  ;;  %v1879_v46 = vrot.slane %v3037_v11, 1  ;;  %v614_v55 = vsel %vm578_vm1, %v609_v42, %v613_v43  ;;  %v620_v34 = vrot.slane %v618_v14, 1  ;;  %v721_v1 = vrot.slane %v719_v52, 1  ;;  %v3265_v43 = vld [vmem:[%s3531_s7 + $0x8c] ss:$0 sps:$4 sm:$0x11]  }
  0x53   : > { %1796 = vrot.lane.b32.xlu0 %v1615_v60, %s3442_s26  ;;  %v2958_v29 = vcombine.low %v2784_v57, %v3815_v24  ;;  %v862_v11 = vrot.slane %v3778_v9, 1  ;;  %v1215_v37 = vshll.u32 %v2966_v25, 16  ;;  %v3841_v14 = vld [vmem:[%s3531_s7 + $0x2c] ss:$0 sps:$4 sm:$0x11]   ;;  %v1213_v45 = vshrl.u32 %v2966_v25, 16 }
  0x54   : > { %v1881_v60 = vsel %vm851_vm0, %v1879_v46, %v1880_v47  ;;  %v621_v6 = vor.u32 %v620_v34, %v616_v56  ;;  %v722_v39 = vsel %vm578_vm1, %v717_v59, %v721_v1  ;;  %v1220_v49 = vshll.u32 %v3265_v43, 16  ;;  %v3846_v52 = vld [vmem:[%s3531_s7 + $0x98] ss:$0 sps:$4 sm:$0x11]   ;;  %v2838_v56 = vld [vmem:[%s3531_s7 + $0x84] sm:$0xe] }
  0x55   : > { %v863_v9 = vsel %vm851_vm0, %v861_v2, %v862_v11  ;;  %v1217_v46 = vrot.slane %v1215_v37, 1  ;;  %v1117_v47 = vshrl.u32 %v2958_v29, 16  ;;  %v1124_v53 = vshll.u32 %v3841_v14, 16  ;;  %v2864_v57 = vld [vmem:[%s3531_s7 + $0x90] sm:$0xf] }
  0x56   : > { %1814 = vrot.lane.b32.xlu1 %v1723_v19, %s3442_s26  ;;  %v858_v19 = vrot.slane %v2942_v0, 1  ;;  %v626_v22 = vsel %vm578_vm1, %v621_v6, %v625_v7  ;;  %v1222_v36 = vrot.slane %v1220_v49, 1  ;;  %v1232_v1 = vshll.u32 %v3846_v52, 16  ;;  %v2866_v11 = vld [vmem:[%s3531_s7 + $0x9c] sm:$0xf] }
  0x57   : > { %1798 = vrot.lane.b32.xlu0 %v1627_v21, %s3442_s26  ;;  %v886_v21 = vrot.slane %v3773_v40, 1  ;;  %v2967_v40 = vcombine.low %v2802_v30, %v3825_v15  ;;  %v1218_v34 = vor.u32 %v1217_v46, %v1213_v45  ;;  %v1126_v0 = vrot.slane %v1124_v53, 1  ;;  %v3879_v15 = vld [vmem:[%s3531_s7 + $0x34] sm:$0xf]  ;;  %v3896_v45 = vld [vmem:[%s3531_s7 + $0x40] sm:$0xf] }
  0x58   : > { %v860_v26 = vsel %vm851_vm0, %v858_v19, %v859_v13  ;;  %v2998_v7 = vcombine.low %v2838_v56, %v3809_v8  ;;  %v2990_v63 = vcombine.low %v2830_v62, %v3815_v24  ;;  %v3870_v24 = vld [vmem:[%s3531_s7 + $0x94] sm:$0xf]  ;;  %v3899_v46 = vld [vmem:[%s3531_s7 + $0x98] ss:$0 sps:$4 sm:$0x11]  }
  0x59   : > { %v887_v5 = vsel %vm851_vm0, %v885_v10, %v886_v21  ;;  %v1227_v44 = vshll.u32 %v2967_v40, 16  ;;  %v1225_v4 = vshrl.u32 %v2967_v40, 16  ;;  %v1223_v13 = vsel %vm578_vm1, %v1218_v34, %v1222_v36  ;;  %v3905_v49 = vld [vmem:[%s3531_s7 + $0x38] ss:$0 sps:$4 sm:$0x11]  }
  0x5a   : > { %1940 = vrot.lane.b32.xlu1 %v1902_v35, %s3443_s29  ;;  %v3831_v35 = vld [vmem:[%s3531_s7 + $0x34] sm:$0xf]  ;;  %v1394_v8 = vrot.slane %v2998_v7, 1  ;;  %v1395_v21 = vrot.slane %v3265_v43, 1  ;;  %v3014_v2 = vcombine.low %v2864_v57, %v3870_v24  ;;  %v1636_v62 = vshll.u32 %v3905_v49, 16 }
  0x5b   : > { %1924 = vrot.lane.b32.xlu0 %v1878_v41, %s3443_s29  ;;  %v1119_v41 = vshll.u32 %v2958_v29, 16  ;;  %v2959_v42 = vcombine.low %v2786_v33, %v3831_v35  ;;  %v1229_v59 = vrot.slane %v1227_v44, 1  ;;  %v3884_v33 = vld [vmem:[%s3531_s7 + $0xa0] sm:$0xf] }
  0x5c   : > { %v1396_v37 = vsel %vm851_vm0, %v1394_v8, %v1395_v21  ;;  %v1727_v44 = vshll.u32 %v3014_v2, 16  ;;  %v1725_v56 = vshrl.u32 %v3014_v2, 16  ;;  %v1638_v8 = vrot.slane %v1636_v62, 1 }
  0x5d   : > { %v1121_v50 = vrot.slane %v1119_v41, 1  ;;  %v1129_v3 = vshrl.u32 %v2959_v42, 16  ;;  %v1230_v16 = vor.u32 %v1229_v59, %v1225_v4  ;;  %v1732_v4 = vshll.u32 %v3899_v46, 16  ;;  %v3916_v59 = vld [vmem:[%s3531_s7 + $0x44] ss:$0 sps:$4 sm:$0x11]  }
  0x5e   : > { %791 = vrot.lane.b32.xlu1 %v710_v48, %s3438_s10  ;;  %v1131_v48 = vshll.u32 %v2959_v42, 16  ;;  %v1729_v34 = vrot.slane %v1727_v44, 1  ;;  %v2903_v44 = vld [vmem:[%s3531_s7 + $0x9c] sm:$0xe] }
  0x5f   : > { %775 = vrot.lane.b32.xlu0 %v614_v55, %s3438_s10  ;;  %v3850_v55 = vld [vmem:[%s3531_s7 + $0x38] ss:$0 sps:$4 sm:$0x11]  }
  0x60   : > { %v1136_v6 = vshll.u32 %v3850_v55, 16  ;;  %v1374_v43 = vrot.slane %v3850_v55, 1  ;;  %v2902_v55 = vld [vmem:[%s3531_s7 + $0x90] sm:$0xe] }
  0x61   : > { %v3046_v7 = vcombine.low %v2902_v55, %v3870_v24  ;;  %v1883_v55 = vrot.slane %v3905_v49, 1 }
  0x62   : > { %1942 = vrot.lane.b32.xlu1 %v1905_v58, %s3443_s29  ;;  %v1122_v58 = vor.u32 %v1121_v50, %v1117_v47  ;;  %v1138_v20 = vrot.slane %v1136_v6, 1  ;;  %v3315_v6 = vld [vmem:[%s4942_s1 + $0x10] ss:$0 sps:$4 sm:$0x33]  }
  0x63   : > { %1926 = vrot.lane.b32.xlu0 %v1881_v60, %s3443_s29  ;;  %v1133_v60 = vrot.slane %v1131_v48, 1  ;;  %3142 = vmatprep.subr.msk.bf16.mxu0 %vm2273_vm2, %v3315_v6 }
  0x64   : > { %v1127_v17 = vsel %vm578_vm1, %v1122_v58, %v1126_v0  ;;  %v3913_v58 = vld [vmem:[%s3531_s7 + $0xa4] ss:$0 sps:$4 sm:$0x11]   ;;  %v280_v0 = vld [vmem:[%s3531_s7 + $0x90] sm:$0xf]  ;;  %3143 = vmatprep.subr.msk.bf16.mxu1 %vm2273_vm2, %v3315_v6 }
  0x65   : > { %v1134_v19 = vor.u32 %v1133_v60, %v1129_v3  ;;  %v3922_v60 = vld [vmem:[%s3531_s7 + $0x94] sm:$0xf] }
  0x66   : > { %793 = vrot.lane.b32.xlu1 %v722_v39, %s3438_s10  ;;  %v1234_v39 = vrot.slane %v1232_v1, 1  ;;  %v3937_v57 = vcombine.low %v280_v0, %v3922_v60 }
  0x67   : > { %777 = vrot.lane.b32.xlu0 %v626_v22, %s3438_s10  ;;  %v2831_v22 = vld [vmem:[%s3531_s7 + $0x30] sm:$0xe]  ;;  %v1139_v30 = vsel %vm578_vm1, %v1134_v19, %v1138_v20  ;;  %v1744_v19 = vshll.u32 %v3913_v58, 16 }
  0x68   : > { %v1235_v10 = vsel %vm578_vm1, %v1230_v16, %v1234_v39  ;;  %v3930_v16 = vld [vmem:[%s3531_s7 + $0x34] sm:$0xf]  ;;  %v1734_v39 = vrot.slane %v1732_v4, 1  ;;  %v2894_v20 = vld [vmem:[%s3531_s7 + $0x30] sm:$0xe]  ;;  %4952 = vst [vmem:[#allocation5_spill] sm:$0xff] %v3937_v57 }
  0x6a   : > { %920 = vrot.lane.b32.xlu1 %v884_v27, %s3437_s9  ;;  %v1371_v27 = vrot.slane %v3841_v14, 1  ;;  %v2850_v14 = vld [vmem:[%s3531_s7 + $0x3c] sm:$0xf] }
  0x6b   : > { %904 = vrot.lane.b32.xlu0 %v860_v26, %s3437_s9  ;;  %v2848_v26 = vld [vmem:[%s3531_s7 + $0x30] sm:$0xf]  ;;  %v3007_v53 = vcombine.low %v2850_v14, %v3896_v45  ;;  %v3961_v14 = vld [vmem:[%s3531_s7 + $0xa0] sm:$0xf] }
  0x6d   : > { %v1643_v3 = vshll.u32 %v3007_v53, 16 }
  0x6e   : > { %922 = vrot.lane.b32.xlu1 %v887_v5, %s3437_s9  ;;  %v3006_v5 = vcombine.low %v2848_v26, %v3879_v15  ;;  %v3946_v26 = vld [vmem:[%s3531_s7 + $0x98] ss:$0 sps:$4 sm:$0x11]  }
  0x6f   : > { %906 = vrot.lane.b32.xlu0 %v863_v9, %s3437_s9  ;;  %v3015_v9 = vcombine.low %v2866_v11, %v3884_v33  ;;  %v1645_v24 = vrot.slane %v1643_v3, 1  ;;  %v1906_v11 = vrot.slane %v3046_v7, 1  ;;  %v731_v4 = vshll.u32 %v3946_v26, 16 }
  0x70   : > { %v1631_v48 = vshll.u32 %v3006_v5, 16  ;;  %v1629_v36 = vshrl.u32 %v3006_v5, 16  ;;  %v3047_v7 = vcombine.low %v2903_v44, %v3884_v33 }
  0x71   : > { %v1737_v12 = vshrl.u32 %v3015_v9, 16 }
  0x72   : > { %1032 = vrot.lane.b32.xlu1 %v2966_v25, %s3436_s8  ;;  %v1370_v25 = vrot.slane %v2990_v63, 1  ;;  %v1633_v1 = vrot.slane %v1631_v48, 1  ;;  %v1730_v63 = vor.u32 %v1729_v34, %v1725_v56  ;;  %v3966_v48 = vld [vmem:[%s3531_s7 + $0x40] sm:$0xf]  ;;  %v724_v56 = vshrl.u32 %v3937_v57, 16 }
  0x73   : > { %1016 = vrot.lane.b32.xlu0 %v2958_v29, %s3436_s8  ;;  %v2991_v29 = vcombine.low %v2831_v22, %v3831_v35  ;;  %v1397_v35 = vrot.slane %v2999_v61, 1  ;;  %v1641_v61 = vshrl.u32 %v3007_v53, 16 }
  0x74   : > { %v1372_v41 = vsel %vm851_vm0, %v1370_v25, %v1371_v27  ;;  %v1634_v22 = vor.u32 %v1633_v1, %v1629_v36  ;;  %v2275_v25 = vsel %vm2273_vm2, %v3315_v6, 0  ;;  %v3038_v27 = vcombine.low %v2894_v20, %v3879_v15 }
  0x75   : > { %3103 = vmatpush3.bf16.msra.mxu0 %v2275_v25  ;;  %3141 = vmatpush3.bf16.msra.mxu1 %v2275_v25  ;;  %v726_v15 = vshll.u32 %v3937_v57, 16  ;;  %v1910_v25 = vrot.slane %v3913_v58, 1 }
  0x76   : > { %1034 = vrot.lane.b32.xlu1 %v2967_v40, %s3436_s8  ;;  %v1398_v40 = vrot.slane %v3846_v52, 1  ;;  %v1739_v52 = vshll.u32 %v3015_v9, 16 }
  0x77   : > { %1018 = vrot.lane.b32.xlu0 %v2959_v42, %s3436_s8  ;;  %v1373_v42 = vrot.slane %v2991_v29, 1  ;;  %v728_v34 = vrot.slane %v726_v15, 1  ;;  %v316_v15 = vld [vmem:[%s3531_s7 + $0x90] sm:$0xe] }
  0x78   : > { %v1399_v47 = vsel %vm851_vm0, %v1397_v35, %v1398_v40  ;;  %v3953_v35 = vld [vmem:[%s3531_s7 + $0x38] ss:$0 sps:$4 sm:$0x11]   ;;  %v1639_v40 = vsel %vm578_vm1, %v1634_v22, %v1638_v8 }
  0x79   : > { %v1375_v50 = vsel %vm851_vm0, %v1373_v42, %v1374_v43  ;;  %v635_v36 = vshll.u32 %v3953_v35, 16 }
  0x7a   : > { %1304 = vrot.lane.b32.xlu1 %v1223_v13, %s3439_s11  ;;  %v264_v13 = vld [vmem:[%s3531_s7 + $0x30] sm:$0xf] }
  0x7b   : > { %1288 = vrot.lane.b32.xlu0 %v1127_v17, %s3439_s11  ;;  %v1741_v17 = vrot.slane %v1739_v52, 1  ;;  %v3941_v21 = vcombine.low %v264_v13, %v3930_v16  ;;  %v729_v13 = vor.u32 %v728_v34, %v724_v56 }
  0x7d   : > { %4953 = vst [vmem:[#allocation6_spill] sm:$0xff] %v3941_v21  ;;  %v1742_v29 = vor.u32 %v1741_v17, %v1737_v12  ;;  %v630_v43 = vshll.u32 %v3941_v21, 16  ;;  %v628_v0 = vshrl.u32 %v3941_v21, 16  ;;  %v637_v17 = vrot.slane %v635_v36, 1 }
  0x7e   : > { %1306 = vrot.lane.b32.xlu1 %v1235_v10, %s3439_s11  ;;  %v1648_v10 = vshll.u32 %v3916_v59, 16 }
  0x7f   : > { %1290 = vrot.lane.b32.xlu0 %v1139_v30, %s3439_s11  ;;  %v1746_v30 = vrot.slane %v1744_v19, 1  ;;  %v632_v3 = vrot.slane %v630_v43, 1  ;;  %v3994_v19 = vld [vmem:[%s3531_s7 + $0xa4] ss:$0 sps:$4 sm:$0x11]  }
  0x80   : > { %v1650_v42 = vrot.slane %v1648_v10, 1  ;;  %v1909_v10 = vrot.slane %v3047_v7, 1  ;;  %v308_v43 = vld [vmem:[%s3531_s7 + $0x30] sm:$0xe] }
  0x81   : > { %v1747_v52 = vsel %vm578_vm1, %v1742_v29, %v1746_v30  ;;  %v633_v8 = vor.u32 %v632_v3, %v628_v0  ;;  %v1886_v29 = vrot.slane %v3916_v59, 1  ;;  %v2944_v34 = vcombine.low %v308_v43, %v3930_v16  ;;  %v2804_v3 = vld [vmem:[%s3531_s7 + $0x9c] sm:$0xf] }
  0x82   : > { %1432 = vrot.lane.b32.xlu1 %v1396_v37, %s3440_s12  ;;  %v1907_v37 = vrot.slane %v3899_v46, 1  ;;  %v2895_v46 = vld [vmem:[%s3531_s7 + $0x3c] sm:$0xe]  ;;  %v1911_v44 = vsel %vm851_vm0, %v1909_v10, %v1910_v25  ;;  %v889_v0 = vrot.slane %v3946_v26, 1  ;;  %v2806_v25 = vld [vmem:[%s3531_s7 + $0xa8] sm:$0xf] }
  0x83   : > { %1416 = vrot.lane.b32.xlu0 %v1372_v41, %s3440_s12  ;;  %v1646_v41 = vor.u32 %v1645_v24, %v1641_v61 }
  0x84   : > { %v1908_v12 = vsel %vm851_vm0, %v1906_v11, %v1907_v37  ;;  %v743_v37 = vshll.u32 %v3994_v19, 16 }
  0x85   : > { %v1651_v62 = vsel %vm578_vm1, %v1646_v41, %v1650_v42 }
  0x86   : > { %1434 = vrot.lane.b32.xlu1 %v1399_v47, %s3440_s12  ;;  %v266_v47 = vld [vmem:[%s3531_s7 + $0x3c] sm:$0xf] }
  0x87   : > { %1418 = vrot.lane.b32.xlu0 %v1375_v50, %s3440_s12  ;;  %v3984_v49 = vcombine.low %v266_v47, %v3966_v48 }
  0x89   : > { %4955 = vst [vmem:[#allocation8_spill] sm:$0xff] %v3984_v49  ;;  %v642_v61 = vshll.u32 %v3984_v49, 16  ;;  %v640_v41 = vshrl.u32 %v3984_v49, 16 }
  0x8a   : > { %1544 = vrot.lane.b32.xlu1 %v3014_v2, %s3441_s21  ;;  %v1735_v2 = vsel %vm578_vm1, %v1730_v63, %v1734_v39  ;;  %v3039_v63 = vcombine.low %v2895_v46, %v3896_v45  ;;  %v733_v39 = vrot.slane %v731_v4, 1  ;;  %v4001_v45 = vld [vmem:[%s3531_s7 + $0x44] ss:$0 sps:$4 sm:$0x11]   ;;  %v745_v46 = vrot.slane %v743_v37, 1 }
  0x8b   : > { %1528 = vrot.lane.b32.xlu0 %v3006_v5, %s3441_s21  ;;  %v644_v42 = vrot.slane %v642_v61, 1  ;;  %v647_v58 = vshll.u32 %v4001_v45, 16  ;;  %v317_v4 = vld [vmem:[%s3531_s7 + $0x9c] sm:$0xe] }
  0x8c   : > { %v734_v30 = vsel %vm578_vm1, %v729_v13, %v733_v39  ;;  %v864_v39 = vrot.slane %v2944_v34, 1 }
  0x8d   : > { %v649_v56 = vrot.slane %v647_v58, 1 }
  0x8e   : > { %1546 = vrot.lane.b32.xlu1 %v3015_v9, %s3441_s21  ;;  %v282_v9 = vld [vmem:[%s3531_s7 + $0x9c] sm:$0xf] }
  0x8f   : > { %1530 = vrot.lane.b32.xlu0 %v3007_v53, %s3441_s21  ;;  %v1882_v53 = vrot.slane %v3038_v27, 1  ;;  %v3979_v1 = vcombine.low %v282_v9, %v3961_v14  ;;  %v1885_v27 = vrot.slane %v3039_v63, 1  ;;  %v2952_v9 = vcombine.low %v316_v15, %v3922_v60  ;;  %v309_v60 = vld [vmem:[%s3531_s7 + $0x3c] sm:$0xe]  ;;  %v2790_v15 = vld [vmem:[%s3531_s7 + $0x48] sm:$0xf] }
  0x90   : > { %v2953_v63 = vcombine.low %v317_v4, %v3961_v14  ;;  %v2945_v26 = vcombine.low %v309_v60, %v3966_v48 }
  0x91   : > { %4954 = vst [vmem:[#allocation7_spill] sm:$0xff] %v3979_v1  ;;  %v738_v20 = vshll.u32 %v3979_v1, 16  ;;  %v1884_v33 = vsel %vm851_vm0, %v1882_v53, %v1883_v55  ;;  %v1887_v53 = vsel %vm851_vm0, %v1885_v27, %v1886_v29  ;;  %v645_v55 = vor.u32 %v644_v42, %v640_v41  ;;  %v4060_v27 = vld [vmem:[%s3531_s7 + $0xac] sm:$0xf] }
  0x92   : > { %v3956_v5 = vpop.permute.xlu1 %1028  ;;  %1816 = vrot.lane.b32.xlu1 %v1735_v2, %s3442_s26  ;;  %v736_v2 = vshrl.u32 %v3979_v1, 16  ;;  %v891_v10 = vrot.slane %v2953_v63, 1  ;;  %v2969_v41 = vcombine.low %v2806_v25, %v4060_v27  ;;  %v4075_v42 = vld [vmem:[%s3531_s7 + $0xa4] ss:$0 sps:$4 sm:$0x11]  }
  0x93   : > { %v3970_v50 = vpop.permute.xlu0 %1012  ;;  %1800 = vrot.lane.b32.xlu0 %v1639_v40, %s3442_s26  ;;  %v740_v11 = vrot.slane %v738_v20, 1  ;;  %v638_v40 = vsel %vm578_vm1, %v633_v8, %v637_v17  ;;  %v650_v13 = vsel %vm578_vm1, %v645_v55, %v649_v56  ;;  %v865_v17 = vrot.slane %v3953_v35, 1  ;;  %v2788_v20 = vld [vmem:[%s3531_s7 + $0x3c] sm:$0xf] }
  0x94   : > { %v892_v35 = vrot.slane %v3994_v19, 1  ;;  %v1251_v55 = vshll.u32 %v2969_v41, 16  ;;  %v1244_v34 = vshll.u32 %v4075_v42, 16  ;;  %v4098_v63 = vld [vmem:[%s3531_s7 + $0x50] ss:$0 sps:$4 sm:$0x11]  }
  0x95   : > { %v741_v47 = vor.u32 %v740_v11, %v736_v2  ;;  %v867_v2 = vrot.slane %v2945_v26, 1  ;;  %v868_v11 = vrot.slane %v4001_v45, 1  ;;  %v2840_v26 = vld [vmem:[%s3531_s7 + $0x9c] sm:$0xe] }
  0x96   : > { %v3986_v6 = vpop.permute.xlu1 %916  ;;  %1818 = vrot.lane.b32.xlu1 %v1747_v52, %s3442_s26  ;;  %v893_v58 = vsel %vm851_vm0, %v891_v10, %v892_v35  ;;  %v1253_v10 = vrot.slane %v1251_v55, 1  ;;  %v2832_v25 = vld [vmem:[%s3531_s7 + $0x3c] sm:$0xe] }
  0x97   : > { %1802 = vrot.lane.b32.xlu0 %v1651_v62, %s3442_s26  ;;  %v888_v62 = vrot.slane %v2952_v9, 1  ;;  %v746_v7 = vsel %vm578_vm1, %v741_v47, %v745_v46  ;;  %v4080_v9 = vld [vmem:[%s3531_s7 + $0x44] ss:$0 sps:$4 sm:$0x11]  }
  0x98   : > { %v3997_v22 = vpop.permute.xlu0 %900 }
  0x99   : > { %v890_v61 = vsel %vm851_vm0, %v888_v62, %v889_v0  ;;  %v4092_v62 = vld [vmem:[%s3531_s7 + $0xb0] ss:$0 sps:$4 sm:$0x11]  }
  0x9a   : > { %1944 = vrot.lane.b32.xlu1 %v1908_v12, %s3443_s29  ;;  %v4039_v12 = vld [vmem:[%s3531_s7 + $0xa0] sm:$0xf]  ;;  %v1256_v35 = vshll.u32 %v4092_v62, 16 }
  0x9b   : > { %v4005_v24 = vpop.permute.xlu1 %918  ;;  %1928 = vrot.lane.b32.xlu0 %v1884_v33, %s3443_s29  ;;  %v4048_v33 = vld [vmem:[%s3531_s7 + $0x40] sm:$0xf]  ;;  %v2968_v14 = vcombine.low %v2804_v3, %v4039_v12 }
  0x9c   : > { %v2960_v48 = vcombine.low %v2788_v20, %v4048_v33  ;;  %v1246_v20 = vrot.slane %v1244_v34, 1  ;;  %v1258_v34 = vrot.slane %v1256_v35, 1 }
  0x9d   : > { %v4017_v59 = vpop.permute.xlu0 %902  ;;  %v1239_v19 = vshll.u32 %v2968_v14, 16 }
  0x9e   : > { %795 = vrot.lane.b32.xlu1 %v734_v30, %s3438_s10  ;;  %v866_v30 = vsel %vm851_vm0, %v864_v39, %v865_v17  ;;  %v1143_v43 = vshll.u32 %v2960_v48, 16  ;;  %v1141_v4 = vshrl.u32 %v2960_v48, 16  ;;  %v1249_v17 = vshrl.u32 %v2969_v41, 16 }
  0x9f   : > { %779 = vrot.lane.b32.xlu0 %v638_v40, %s3438_s10  ;;  %v4070_v40 = vld [vmem:[%s3531_s7 + $0x4c] sm:$0xf]  ;;  %v1241_v56 = vrot.slane %v1239_v19, 1 }
  0xa0   : > { %v4024_v52 = vpop.permute.xlu1 %773  ;;  %v2961_v47 = vcombine.low %v2790_v15, %v4070_v40  ;;  %v1145_v60 = vrot.slane %v1143_v43, 1  ;;  %v1160_v15 = vshll.u32 %v4098_v63, 16  ;;  %v4114_v43 = vld [vmem:[%s3531_s7 + $0xac] sm:$0xf] }
  0xa1   : > { %v4029_v36 = vpop.permute.xlu0 %771 }
  0xa2   : > { %1946 = vrot.lane.b32.xlu1 %v1911_v44, %s3443_s29  ;;  %v869_v44 = vsel %vm851_vm0, %v867_v2, %v868_v11  ;;  %v1155_v3 = vshll.u32 %v2961_v47, 16  ;;  %v1153_v11 = vshrl.u32 %v2961_v47, 16 }
  0xa3   : > { %1930 = vrot.lane.b32.xlu0 %v1887_v53, %s3443_s29  ;;  %v1237_v53 = vshrl.u32 %v2968_v14, 16 }
  0xa4   : > { %v4041_v16 = vpop.permute.xlu1 %789 }
  0xa5   : > { %v4050_v8 = vpop.permute.xlu0 %787  ;;  %v1242_v39 = vor.u32 %v1241_v56, %v1237_v53  ;;  %v2841_v53 = vld [vmem:[%s3531_s7 + $0xa8] sm:$0xe]  ;;  %v1254_v56 = vor.u32 %v1253_v10, %v1249_v17  ;;  %v4140_v10 = vld [vmem:[%s3531_s7 + $0xb8] sm:$0xf] }
  0xa6   : > { %797 = vrot.lane.b32.xlu1 %v746_v7, %s3438_s10  ;;  %v1148_v7 = vshll.u32 %v4080_v9, 16  ;;  %v3001_v17 = vcombine.low %v2841_v53, %v4060_v27  ;;  %v4148_v27 = vld [vmem:[%s3531_s7 + $0x58] sm:$0xf] }
  0xa7   : > { %781 = vrot.lane.b32.xlu0 %v650_v13, %s3438_s10  ;;  %v1247_v55 = vsel %vm578_vm1, %v1242_v39, %v1246_v20  ;;  %v4133_v39 = vld [vmem:[%s3531_s7 + $0x4c] sm:$0xf]  ;;  %v1401_v20 = vrot.slane %v4075_v42, 1 }
  0xa8   : > { %v4062_v29 = vpop.permute.xlu1 %1030  ;;  %v1150_v2 = vrot.slane %v1148_v7, 1  ;;  %v1162_v7 = vrot.slane %v1160_v15, 1 }
  0xa9   : > { %v4066_v37 = vpop.permute.xlu0 %1014 }
  0xaa   : > { %924 = vrot.lane.b32.xlu1 %v890_v61, %s3437_s9  ;;  %v1146_v61 = vor.u32 %v1145_v60, %v1141_v4  ;;  %v2833_v4 = vld [vmem:[%s3531_s7 + $0x48] sm:$0xe] }
  0xab   : > { %908 = vrot.lane.b32.xlu0 %v866_v30, %s3437_s9  ;;  %v2993_v35 = vcombine.low %v2833_v4, %v4070_v40  ;;  %v4158_v40 = vld [vmem:[%s3531_s7 + $0xb0] ss:$0 sps:$4 sm:$0x11]   ;;  %v1404_v4 = vrot.slane %v4092_v62, 1 }
  0xac   : > { %v4082_v45 = vpop.permute.xlu1 %1300 }
  0xad   : > { %v4086_v46 = vpop.permute.xlu0 %1284 }
  0xae   : > { %926 = vrot.lane.b32.xlu1 %v893_v58, %s3437_s9  ;;  %v2868_v58 = vld [vmem:[%s3531_s7 + $0xa8] sm:$0xf] }
  0xaf   : > { %910 = vrot.lane.b32.xlu0 %v869_v44, %s3437_s9  ;;  %v2992_v44 = vcombine.low %v2832_v25, %v4048_v33  ;;  %v1259_v25 = vsel %vm578_vm1, %v1254_v56, %v1258_v34 }
  0xb0   : > { %v4094_v0 = vpop.permute.xlu1 %1302 }
  0xb1   : > { %v4100_v13 = vpop.permute.xlu0 %1286 }
  0xb2   : > { %1036 = vrot.lane.b32.xlu1 %v2968_v14, %s3436_s8  ;;  %v1157_v14 = vrot.slane %v1155_v3, 1  ;;  %v1151_v3 = vsel %vm578_vm1, %v1146_v61, %v1150_v2  ;;  %v2870_v61 = vld [vmem:[%s3531_s7 + $0xb4] sm:$0xf]  ;;  %v1376_v2 = vrot.slane %v2992_v44, 1 }
  0xb3   : > { %1020 = vrot.lane.b32.xlu0 %v2960_v48, %s3436_s8  ;;  %v3000_v48 = vcombine.low %v2840_v26, %v4039_v12  ;;  %v4163_v44 = vcombine.low %v2870_v61, %v4140_v10 }
  0xb4   : > { %v4107_v30 = vpop.permute.xlu1 %1428  ;;  %v1158_v12 = vor.u32 %v1157_v14, %v1153_v11  ;;  %v1377_v11 = vrot.slane %v4080_v9, 1  ;;  %v2854_v14 = vld [vmem:[%s3531_s7 + $0x54] sm:$0xf] }
  0xb5   : > { %v4110_v19 = vpop.permute.xlu0 %1412  ;;  %v1400_v26 = vrot.slane %v3000_v48, 1  ;;  %v4168_v56 = vcombine.low %v2854_v14, %v4148_v27  ;;  %v1763_v62 = vshll.u32 %v4163_v44, 16 }
  0xb6   : > { %1038 = vrot.lane.b32.xlu1 %v2969_v41, %s3436_s8  ;;  %v4127_v41 = vcombine.low %v2868_v58, %v4114_v43  ;;  %v1163_v58 = vsel %vm578_vm1, %v1158_v12, %v1162_v7  ;;  %v1378_v34 = vsel %vm851_vm0, %v1376_v2, %v1377_v11  ;;  %v1380_v12 = vrot.slane %v4098_v63, 1  ;;  %v4183_v63 = vld [vmem:[%s3531_s7 + $0x50] ss:$0 sps:$4 sm:$0x11]  }
  0xb7   : > { %1022 = vrot.lane.b32.xlu0 %v2961_v47, %s3436_s8  ;;  %v2852_v47 = vld [vmem:[%s3531_s7 + $0x48] sm:$0xf]  ;;  %v1402_v9 = vsel %vm851_vm0, %v1400_v26, %v1401_v20  ;;  %v1756_v20 = vshll.u32 %v4158_v40, 16  ;;  %v4191_v2 = vld [vmem:[%s3531_s7 + $0xbc] ss:$0 sps:$4 sm:$0x11]   ;;  %v1958_v11 = vsel %vm1956_vm3, %v3568_v23, %v4029_v36 }
  0xb8   : > { %v4123_v60 = vpop.permute.xlu1 %1430  ;;  %v1751_v42 = vshll.u32 %v4127_v41, 16  ;;  %v4155_v48 = vcombine.low %v2852_v47, %v4133_v39 }
  0xb9   : > { %v4129_v33 = vpop.permute.xlu0 %1414  ;;  %v1758_v1 = vrot.slane %v1756_v20, 1 }
  0xba   : > { %1308 = vrot.lane.b32.xlu1 %v1247_v55, %s3439_s11  ;;  %v1403_v55 = vrot.slane %v3001_v17, 1  ;;  %v1655_v47 = vshll.u32 %v4155_v48, 16  ;;  %v1749_v17 = vshrl.u32 %v4127_v41, 16  ;;  %v1753_v26 = vrot.slane %v1751_v42, 1 }
  0xbb   : > { %1292 = vrot.lane.b32.xlu0 %v1151_v3, %s3439_s11  ;;  %v1379_v3 = vrot.slane %v2993_v35, 1  ;;  %v1974_v35 = vsel %vm1956_vm3, %v3563_v18, %v4050_v8  ;;  %v2904_v18 = vld [vmem:[%s3531_s7 + $0xa8] sm:$0xe]  ;;  %v4201_v8 = vld [vmem:[%s3531_s7 + $0x5c] ss:$0 sps:$4 sm:$0x11]  }
  0xbc   : > { %v4150_v15 = vpop.permute.xlu1 %1540  ;;  %v1405_v14 = vsel %vm851_vm0, %v1403_v55, %v1404_v4  ;;  %v1754_v49 = vor.u32 %v1753_v26, %v1749_v17  ;;  %v1653_v21 = vshrl.u32 %v4155_v48, 16  ;;  %v1657_v57 = vrot.slane %v1655_v47, 1 }
  0xbd   : > { %v4160_v53 = vpop.permute.xlu0 %1524  ;;  %v2007_v23 = vsel %vm1989_vm4, %v1974_v35, %v3986_v6  ;;  %v1761_v55 = vshrl.u32 %v4163_v44, 16  ;;  %v1765_v4 = vrot.slane %v1763_v62, 1  ;;  %v1665_v47 = vshrl.u32 %v4168_v56, 16 }
  0xbe   : > { %1310 = vrot.lane.b32.xlu1 %v1259_v25, %s3439_s11  ;;  %v1667_v25 = vshll.u32 %v4168_v56, 16  ;;  %v3048_v6 = vcombine.low %v2904_v18, %v4114_v43  ;;  %v1672_v20 = vshll.u32 %v4201_v8, 16  ;;  %v1759_v35 = vsel %vm578_vm1, %v1754_v49, %v1758_v1 }
  0xbf   : > { %1294 = vrot.lane.b32.xlu0 %v1163_v58, %s3439_s11  ;;  %v1381_v58 = vsel %vm851_vm0, %v1379_v3, %v1380_v12  ;;  %v1991_v3 = vsel %vm1989_vm4, %v1958_v11, %v3997_v22  ;;  %v1768_v12 = vshll.u32 %v4191_v2, 16  ;;  %v2040_v22 = vsel %vm2022_vm5, %v2007_v23, %v3956_v5  ;;  %v284_v11 = vld [vmem:[%s3531_s7 + $0xa8] sm:$0xf]  ;;  %v4235_v23 = vld [vmem:[%s3531_s7 + $0x4c] sm:$0xf] }
  0xc0   : > { %v4174_v7 = vpop.permute.xlu1 %1542  ;;  %v1669_v17 = vrot.slane %v1667_v25, 1  ;;  %v1658_v25 = vor.u32 %v1657_v57, %v1653_v21  ;;  %v2073_v43 = vsel %vm2055_vm6, %v2040_v22, %v4082_v45  ;;  %v268_v5 = vld [vmem:[%s3531_s7 + $0x48] sm:$0xf]  ;;  %v286_v22 = vld [vmem:[%s3531_s7 + $0xb4] sm:$0xf] }
  0xc1   : > { %v4179_v61 = vpop.permute.xlu0 %1526  ;;  %v2106_v57 = vsel %vm2088_vm7, %v2073_v43, %v4107_v30  ;;  %v1770_v21 = vrot.slane %v1768_v12, 1  ;;  %v1976_v30 = vsel %vm1956_vm3, %v3575_v31, %v4041_v16  ;;  %v1912_v31 = vrot.slane %v3048_v6, 1  ;;  %v4267_v16 = vld [vmem:[%s3531_s7 + $0xb0] ss:$0 sps:$4 sm:$0x11]  }
  0xc2   : > { %1436 = vrot.lane.b32.xlu1 %v1402_v9, %s3440_s12  ;;  %v2896_v9 = vld [vmem:[%s3531_s7 + $0x48] sm:$0xe]  ;;  %v1670_v49 = vor.u32 %v1669_v17, %v1665_v47  ;;  %v2139_v45 = vsel %vm2121_vm8, %v2106_v57, %v4150_v15  ;;  %v4259_v15 = vcombine.low %v268_v5, %v4235_v23  ;;  %v2009_v47 = vsel %vm1989_vm4, %v1976_v30, %v4005_v24 }
  0xc3   : > { %1420 = vrot.lane.b32.xlu0 %v1378_v34, %s3440_s12  ;;  %v1660_v34 = vshll.u32 %v4183_v63, 16  ;;  %v3040_v26 = vcombine.low %v2896_v9, %v4133_v39  ;;  %v2024_v39 = vsel %vm2022_vm5, %v1991_v3, %v3970_v50  ;;  %v1766_v9 = vor.u32 %v1765_v4, %v1761_v55 }
  0xc4   : > { %v1813_v42 = vpop.permute.xlu1 %1812  ;;  %v2057_v1 = vsel %vm2055_vm6, %v2024_v39, %v4086_v46  ;;  %v1889_v17 = vrot.slane %v4183_v63, 1  ;;  %v755_v43 = vshll.u32 %v4267_v16, 16  ;;  %v270_v39 = vld [vmem:[%s3531_s7 + $0x54] sm:$0xf] }
  0xc5   : > { %v1797_v36 = vpop.permute.xlu0 %1796  ;;  %v1662_v18 = vrot.slane %v1660_v34, 1  ;;  %v2090_v50 = vsel %vm2088_vm7, %v2057_v1, %v4110_v19  ;;  %v1674_v34 = vrot.slane %v1672_v20, 1  ;;  %v2172_v19 = vsel %vm2154_vm9, %v2139_v45, %v1813_v42 }
  0xc6   : > { %1438 = vrot.lane.b32.xlu1 %v1405_v14, %s3440_s12  ;;  %v4225_v14 = vld [vmem:[%s3531_s7 + $0xac] sm:$0xf]  ;;  %v654_v20 = vshll.u32 %v4259_v15, 16 }
  0xc7   : > { %1422 = vrot.lane.b32.xlu0 %v1381_v58, %s3440_s12  ;;  %v4250_v46 = vcombine.low %v284_v11, %v4225_v14  ;;  %v1663_v42 = vsel %vm578_vm1, %v1658_v25, %v1662_v18  ;;  %v4296_v25 = vld [vmem:[%s3531_s7 + $0xb8] sm:$0xf] }
  0xc8   : > { %v4220_v62 = vpop.permute.xlu1 %1814  ;;  %v4308_v18 = vld [vmem:[%s3531_s7 + $0x58] sm:$0xf] }
  0xc9   : > { %v4231_v58 = vpop.permute.xlu0 %1798  ;;  %v750_v6 = vshll.u32 %v4250_v46, 16 }
  0xca   : > { %1548 = vrot.lane.b32.xlu1 %v4127_v41, %s3441_s21  ;;  %v2123_v41 = vsel %vm2121_vm8, %v2090_v50, %v4160_v53  ;;  %v4325_v50 = vcombine.low %v286_v22, %v4296_v25 }
  0xcb   : > { %1532 = vrot.lane.b32.xlu0 %v4155_v48, %s3441_s21  ;;  %v1960_v48 = vsel %vm1956_vm3, %v3581_v38, %v4024_v52  ;;  %v2156_v4 = vsel %vm2154_vm9, %v2123_v41, %v1797_v36  ;;  %v1913_v38 = vrot.slane %v4158_v40, 1  ;;  %v1888_v52 = vrot.slane %v3040_v26, 1  ;;  %v4276_v36 = vld [vmem:[%s3531_s7 + $0x50] ss:$0 sps:$4 sm:$0x11]  }
  0xcc   : > { %v1941_v55 = vpop.permute.xlu1 %1940  ;;  %v2042_v40 = vsel %vm2022_vm5, %v2009_v47, %v4062_v29  ;;  %v1993_v26 = vsel %vm1989_vm4, %v1960_v48, %v4017_v59  ;;  %v748_v59 = vshrl.u32 %v4250_v46, 16  ;;  %v757_v48 = vrot.slane %v755_v43, 1  ;;  %v310_v43 = vld [vmem:[%s3531_s7 + $0x48] sm:$0xe] }
  0xcd   : > { %v1925_v3 = vpop.permute.xlu0 %1924  ;;  %v2205_v12 = vsel %vm2187_vm10, %v2172_v19, %v1941_v55  ;;  %v2026_v63 = vsel %vm2022_vm5, %v1993_v26, %v4066_v37  ;;  %v2075_v29 = vsel %vm2055_vm6, %v2042_v40, %v4094_v0  ;;  %v652_v37 = vshrl.u32 %v4259_v15, 16 }
  0xce   : > { %1550 = vrot.lane.b32.xlu1 %v4163_v44, %s3441_s21  ;;  %v2189_v53 = vsel %vm2187_vm10, %v2156_v4, %v1925_v3  ;;  %3120 = vmatprep.mubr.msk.bf16.mxu1 %vm2240_vm11, %v2205_v12  ;;  %v1771_v44 = vsel %vm578_vm1, %v1766_v9, %v1770_v21  ;;  %v2059_v9 = vsel %vm2055_vm6, %v2026_v63, %v4100_v13  ;;  %v659_v0 = vshll.u32 %v4276_v36, 16  ;;  %v2905_v21 = vld [vmem:[%s3531_s7 + $0xb4] sm:$0xe]  ;;  %v4346_v4 = vld [vmem:[%s3531_s7 + $0xbc] ss:$0 sps:$4 sm:$0x11]  }
  0xcf   : > { %1534 = vrot.lane.b32.xlu0 %v4168_v56, %s3441_s21  ;;  %3104 = vmatprep.mubr.msk.bf16.mxu0 %vm2240_vm11, %v2189_v53  ;;  %v1675_v56 = vsel %vm578_vm1, %v1670_v49, %v1674_v34  ;;  %v2108_v5 = vsel %vm2088_vm7, %v2075_v29, %v4123_v60  ;;  %v2092_v1 = vsel %vm2088_vm7, %v2059_v9, %v4129_v33  ;;  %v2897_v49 = vld [vmem:[%s3531_s7 + $0x54] sm:$0xe]  ;;  %v752_v13 = vrot.slane %v750_v6, 1 }
  0xd0   : > { %v4290_v24 = vpop.permute.xlu1 %791  ;;  %v2141_v57 = vsel %vm2121_vm8, %v2108_v5, %v4174_v7  ;;  %v2125_v60 = vsel %vm2121_vm8, %v2092_v1, %v4179_v61  ;;  %v656_v33 = vrot.slane %v654_v20, 1  ;;  %v4332_v34 = vcombine.low %v270_v39, %v4308_v18 }
  0xd1   : > { %v4302_v11 = vpop.permute.xlu0 %775  ;;  %v2158_v7 = vsel %vm2154_vm9, %v2125_v60, %v4231_v58  ;;  %v3049_v19 = vcombine.low %v2905_v21, %v4140_v10  ;;  %v3041_v61 = vcombine.low %v2897_v49, %v4148_v27  ;;  %v753_v58 = vor.u32 %v752_v13, %v748_v59  ;;  %v319_v13 = vld [vmem:[%s3531_s7 + $0xb4] sm:$0xe] }
  0xd2   : > { %1820 = vrot.lane.b32.xlu1 %v1759_v35, %s3442_s26  ;;  %v2174_v35 = vsel %vm2154_vm9, %v2141_v57, %v4220_v62  ;;  %v1914_v62 = vsel %vm851_vm0, %v1912_v31, %v1913_v38  ;;  %v762_v10 = vshll.u32 %v4325_v50, 16  ;;  %v1890_v27 = vsel %vm851_vm0, %v1888_v52, %v1889_v17 }
  0xd3   : > { %1804 = vrot.lane.b32.xlu0 %v1663_v42, %s3442_s26  ;;  %v657_v12 = vor.u32 %v656_v33, %v652_v37  ;;  %v661_v53 = vrot.slane %v659_v0, 1  ;;  %v4353_v42 = vld [vmem:[%s3531_s7 + $0x5c] ss:$0 sps:$4 sm:$0x11]   ;;  %v666_v47 = vshll.u32 %v4332_v34, 16  ;;  %v1915_v31 = vrot.slane %v3049_v19, 1 }
  0xd4   : > { %v1943_v45 = vpop.permute.xlu1 %1942  ;;  %v1916_v38 = vrot.slane %v4191_v2, 1  ;;  %v1891_v6 = vrot.slane %v3041_v61, 1  ;;  %v1892_v40 = vrot.slane %v4201_v8, 1  ;;  %v758_v52 = vsel %vm578_vm1, %v753_v58, %v757_v48  ;;  %v318_v8 = vld [vmem:[%s3531_s7 + $0xa8] sm:$0xe] }
  0xd5   : > { %v2207_v30 = vsel %vm2187_vm10, %v2174_v35, %v1943_v45  ;;  %v1927_v41 = vpop.permute.xlu0 %1926  ;;  %v760_v17 = vshrl.u32 %v4325_v50, 16  ;;  %v764_v26 = vrot.slane %v762_v10, 1  ;;  %v662_v22 = vsel %vm578_vm1, %v657_v12, %v661_v53  ;;  %v311_v35 = vld [vmem:[%s3531_s7 + $0x54] sm:$0xe] }
  0xd6   : > { %v2191_v55 = vsel %vm2187_vm10, %v2158_v7, %v1927_v41  ;;  %1822 = vrot.lane.b32.xlu1 %v1771_v44, %s3442_s26  ;;  %3121 = vmatmul.mubr.msk.bf16.vlgmr.msra.gmra.mrb[0].mxu1 %vm2240_vm11, %v2207_v30  ;;  %v664_v63 = vshrl.u32 %v4332_v34, 16  ;;  %v668_v29 = vrot.slane %v666_v47, 1  ;;  %v671_v2 = vshll.u32 %v4353_v42, 16  ;;  %v2792_v48 = vld [vmem:[%s3531_s7 + $0x54] sm:$0xf] }
  0xd7   : > { %1806 = vrot.lane.b32.xlu0 %v1675_v56, %s3442_s26  ;;  %3105 = vmatmul.mubr.msk.bf16.vlgmr.msra.gmra.mrb[0].mxu0 %vm2240_vm11, %v2191_v55  ;;  %v767_v56 = vshll.u32 %v4346_v4, 16  ;;  %v1917_v39 = vsel %vm851_vm0, %v1915_v31, %v1916_v38  ;;  %v765_v9 = vor.u32 %v764_v26, %v760_v17  ;;  %v2954_v37 = vcombine.low %v318_v8, %v4225_v14  ;;  %v2808_v55 = vld [vmem:[%s3531_s7 + $0xb4] sm:$0xf]  ;;  %v2810_v38 = vld [vmem:[%s3531_s7 + $0xc0] sm:$0xf] }
  0xd8   : > { %v4349_v3 = vpop.permute.xlu1 %793  ;;  %v1893_v1 = vsel %vm851_vm0, %v1891_v6, %v1892_v40  ;;  %v669_v57 = vor.u32 %v668_v29, %v664_v63  ;;  %v673_v21 = vrot.slane %v671_v2, 1  ;;  %v2946_v49 = vcombine.low %v310_v43, %v4235_v23  ;;  %v4418_v6 = vld [vmem:[%s3531_s7 + $0xc4] sm:$0xf] }
  0xd9   : > { %v4356_v44 = vpop.permute.xlu0 %777  ;;  %v769_v5 = vrot.slane %v767_v56, 1  ;;  %v894_v45 = vrot.slane %v2954_v37, 1  ;;  %v895_v33 = vrot.slane %v4267_v16, 1  ;;  %v2955_v7 = vcombine.low %v319_v13, %v4296_v25  ;;  %v4404_v16 = vld [vmem:[%s3531_s7 + $0x58] sm:$0xf] }
  0xda   : > { %1948 = vrot.lane.b32.xlu1 %v1914_v62, %s3443_s29  ;;  %v674_v23 = vsel %vm578_vm1, %v669_v57, %v673_v21  ;;  %v870_v41 = vrot.slane %v2946_v49, 1  ;;  %v871_v19 = vrot.slane %v4276_v36, 1  ;;  %v2947_v61 = vcombine.low %v311_v35, %v4308_v18  ;;  %v4398_v62 = vld [vmem:[%s3531_s7 + $0xb8] sm:$0xf]  ;;  %v4424_v17 = vld [vmem:[%s3531_s7 + $0x64] sm:$0xf] }
  0xdb   : > { %1932 = vrot.lane.b32.xlu0 %v1890_v27, %s3443_s29  ;;  %v770_v14 = vsel %vm578_vm1, %v765_v9, %v769_v5  ;;  %v896_v36 = vsel %vm851_vm0, %v894_v45, %v895_v33  ;;  %v897_v25 = vrot.slane %v2955_v7, 1  ;;  %v898_v18 = vrot.slane %v4346_v4, 1  ;;  %v4428_v4 = vld [vmem:[%s3531_s7 + $0xbc] ss:$0 sps:$4 sm:$0x11]  }
  0xdc   : > { %v4365_v20 = vpop.permute.xlu1 %920  ;;  %v2970_v10 = vcombine.low %v2808_v55, %v4398_v62  ;;  %v872_v12 = vsel %vm851_vm0, %v870_v41, %v871_v19  ;;  %v873_v53 = vrot.slane %v2947_v61, 1  ;;  %v874_v47 = vrot.slane %v4353_v42, 1  ;;  %v4452_v35 = vld [vmem:[%s3531_s7 + $0x68] ss:$0 sps:$4 sm:$0x11]  }
  0xdd   : > { %v4371_v59 = vpop.permute.xlu0 %904  ;;  %v2962_v31 = vcombine.low %v2792_v48, %v4404_v16  ;;  %v899_v26 = vsel %vm851_vm0, %v897_v25, %v898_v18  ;;  %v2971_v42 = vcombine.low %v2810_v38, %v4418_v6  ;;  %v1268_v9 = vshll.u32 %v4428_v4, 16 }
  0xde   : > { %799 = vrot.lane.b32.xlu1 %v758_v52, %s3438_s10  ;;  %v2794_v52 = vld [vmem:[%s3531_s7 + $0x60] sm:$0xf]  ;;  %v1263_v56 = vshll.u32 %v2970_v10, 16  ;;  %v875_v29 = vsel %vm851_vm0, %v873_v53, %v874_v47  ;;  %v1184_v18 = vshll.u32 %v4452_v35, 16  ;;  %v2834_v53 = vld [vmem:[%s3531_s7 + $0x54] sm:$0xe] }
  0xdf   : > { %783 = vrot.lane.b32.xlu0 %v662_v22, %s3438_s10  ;;  %v4434_v22 = vld [vmem:[%s3531_s7 + $0x5c] ss:$0 sps:$4 sm:$0x11]   ;;  %v2963_v2 = vcombine.low %v2794_v52, %v4424_v17  ;;  %v1167_v8 = vshll.u32 %v2962_v31, 16  ;;  %v1275_v57 = vshll.u32 %v2971_v42, 16  ;;  %v1165_v49 = vshrl.u32 %v2962_v31, 16 }
  0xe0   : > { %v4378_v0 = vpop.permute.xlu1 %922  ;;  %v1265_v5 = vrot.slane %v1263_v56, 1  ;;  %v1172_v37 = vshll.u32 %v4434_v22, 16  ;;  %v1270_v33 = vrot.slane %v1268_v9, 1  ;;  %v1273_v7 = vshrl.u32 %v2971_v42, 16  ;;  %v2843_v9 = vld [vmem:[%s3531_s7 + $0xc0] sm:$0xe] }
  0xe1   : > { %v4383_v60 = vpop.permute.xlu0 %906  ;;  %v1169_v13 = vrot.slane %v1167_v8, 1  ;;  %v1277_v19 = vrot.slane %v1275_v57, 1  ;;  %v1186_v8 = vrot.slane %v1184_v18, 1 }
  0xe2   : > { %1950 = vrot.lane.b32.xlu1 %v1917_v39, %s3443_s29  ;;  %v1261_v39 = vshrl.u32 %v2970_v10, 16  ;;  %v1174_v41 = vrot.slane %v1172_v37, 1  ;;  %v4480_v37 = vld [vmem:[%s3531_s7 + $0xc4] sm:$0xf] }
  0xe3   : > { %1934 = vrot.lane.b32.xlu0 %v1893_v1, %s3443_s29  ;;  %v4447_v1 = vld [vmem:[%s3531_s7 + $0xc8] ss:$0 sps:$4 sm:$0x11]   ;;  %v1170_v48 = vor.u32 %v1169_v13, %v1165_v49  ;;  %v3003_v13 = vcombine.low %v2843_v9, %v4418_v6 }
  0xe4   : > { %v4391_v30 = vpop.permute.xlu1 %1032  ;;  %v1280_v61 = vshll.u32 %v4447_v1, 16  ;;  %v1410_v18 = vrot.slane %v4447_v1, 1 }
  0xe5   : > { %v4400_v58 = vpop.permute.xlu0 %1016  ;;  %v1175_v56 = vsel %vm578_vm1, %v1170_v48, %v1174_v41  ;;  %v2874_v48 = vld [vmem:[%s3531_s7 + $0xcc] sm:$0xf] }
  0xe6   : > { %801 = vrot.lane.b32.xlu1 %v770_v14, %s3438_s10  ;;  %v1179_v14 = vshll.u32 %v2963_v2, 16  ;;  %v1282_v38 = vrot.slane %v1280_v61, 1 }
  0xe7   : > { %785 = vrot.lane.b32.xlu0 %v674_v23, %s3438_s10  ;;  %v1266_v23 = vor.u32 %v1265_v5, %v1261_v39  ;;  %v2994_v39 = vcombine.low %v2834_v53, %v4404_v16  ;;  %v2872_v5 = vld [vmem:[%s3531_s7 + $0xc0] sm:$0xf]  ;;  %v1383_v16 = vrot.slane %v4434_v22, 1  ;;  %v4503_v22 = vld [vmem:[%s3531_s7 + $0xd0] sm:$0xf] }
  0xe8   : > { %v4411_v27 = vpop.permute.xlu1 %1034  ;;  %v1181_v25 = vrot.slane %v1179_v14, 1  ;;  %v2856_v14 = vld [vmem:[%s3531_s7 + $0x60] sm:$0xf] }
  0xe9   : > { %v4420_v40 = vpop.permute.xlu0 %1018  ;;  %v1271_v47 = vsel %vm578_vm1, %v1266_v23, %v1270_v33  ;;  %v4490_v33 = vld [vmem:[%s3531_s7 + $0x64] sm:$0xf]  ;;  %v1382_v41 = vrot.slane %v2994_v39, 1  ;;  %v4525_v39 = vld [vmem:[%s3531_s7 + $0x68] ss:$0 sps:$4 sm:$0x11]  }
  0xea   : > { %928 = vrot.lane.b32.xlu1 %v896_v36, %s3437_s9  ;;  %v1177_v36 = vshrl.u32 %v2963_v2, 16  ;;  %v3010_v6 = vcombine.low %v2856_v14, %v4490_v33  ;;  %v1684_v14 = vshll.u32 %v4525_v39, 16 }
  0xeb   : > { %912 = vrot.lane.b32.xlu0 %v872_v12, %s3437_s9  ;;  %v2842_v12 = vld [vmem:[%s3531_s7 + $0xb4] sm:$0xe]  ;;  %v1384_v53 = vsel %vm851_vm0, %v1382_v41, %v1383_v16  ;;  %v1978_v41 = vsel %vm1956_vm3, %v3719_v51, %v4290_v24 }
  0xec   : > { %v4436_v63 = vpop.permute.xlu1 %1304  ;;  %v3002_v52 = vcombine.low %v2842_v12, %v4398_v62  ;;  %v1407_v62 = vrot.slane %v4428_v4, 1  ;;  %v1679_v9 = vshll.u32 %v3010_v6, 16 }
  0xed   : > { %v4440_v43 = vpop.permute.xlu0 %1288 }
  0xee   : > { %930 = vrot.lane.b32.xlu1 %v899_v26, %s3437_s9  ;;  %v1406_v49 = vrot.slane %v3002_v52, 1 }
  0xef   : > { %914 = vrot.lane.b32.xlu0 %v875_v29, %s3437_s9  ;;  %v1182_v29 = vor.u32 %v1181_v25, %v1177_v36  ;;  %v4506_v36 = vld [vmem:[%s3531_s7 + $0xc8] ss:$0 sps:$4 sm:$0x11]   ;;  %v1409_v25 = vrot.slane %v3003_v13, 1 }
  0xf0   : > { %v4449_v21 = vpop.permute.xlu1 %1306  ;;  %v1780_v1 = vshll.u32 %v4506_v36, 16 }
  0xf1   : > { %v4454_v45 = vpop.permute.xlu0 %1290  ;;  %v1187_v23 = vsel %vm578_vm1, %v1182_v29, %v1186_v8  ;;  %v4519_v29 = vcombine.low %v2874_v48, %v4503_v22  ;;  %v4522_v8 = vld [vmem:[%s3531_s7 + $0x70] sm:$0xf]  ;;  %v1677_v48 = vshrl.u32 %v3010_v6, 16 }
  0xf2   : > { %1040 = vrot.lane.b32.xlu1 %v2970_v10, %s3436_s8 }
  0xf3   : > { %1024 = vrot.lane.b32.xlu0 %v2962_v31, %s3436_s8  ;;  %v1278_v31 = vor.u32 %v1277_v19, %v1273_v7  ;;  %v3018_v19 = vcombine.low %v2872_v5, %v4480_v37 }
  0xf4   : > { %v4459_v55 = vpop.permute.xlu1 %1432 }
  0xf5   : > { %v4463_v10 = vpop.permute.xlu0 %1416  ;;  %v1283_v57 = vsel %vm578_vm1, %v1278_v31, %v1282_v38  ;;  %v1386_v31 = vrot.slane %v4452_v35, 1  ;;  %v2858_v38 = vld [vmem:[%s3531_s7 + $0x6c] sm:$0xf]  ;;  %v1775_v52 = vshll.u32 %v3018_v19, 16  ;;  %v1411_v35 = vsel %vm851_vm0, %v1409_v25, %v1410_v18 }
  0xf6   : > { %1042 = vrot.lane.b32.xlu1 %v2971_v42, %s3436_s8  ;;  %v1962_v25 = vsel %vm1956_vm3, %v3722_v54, %v4302_v11  ;;  %v2011_v18 = vsel %vm1989_vm4, %v1978_v41, %v4365_v20 }
  0xf7   : > { %1026 = vrot.lane.b32.xlu0 %v2963_v2, %s3436_s8  ;;  %v2835_v2 = vld [vmem:[%s3531_s7 + $0x60] sm:$0xe]  ;;  %v1777_v16 = vrot.slane %v1775_v52, 1  ;;  %v1995_v51 = vsel %vm1989_vm4, %v1962_v25, %v4371_v59  ;;  %v2044_v24 = vsel %vm2022_vm5, %v2011_v18, %v4391_v30  ;;  %s237_s8 = sand.u32 1, %s3418_s16  }
  0xf8   : > { %v4470_v26 = vpop.permute.xlu1 %1434  ;;  %v2995_v4 = vcombine.low %v2835_v2, %v4424_v17  ;;  %v1408_v17 = vsel %vm851_vm0, %v1406_v49, %v1407_v62  ;;  %v4532_v2 = vld [vmem:[%s3531_s7 + $0xd4] ss:$0 sps:$4 sm:$0x11]   ;;  %v1773_v49 = vshrl.u32 %v3018_v19, 16  ;;  %v2028_v20 = vsel %vm2022_vm5, %v1995_v51, %v4400_v58  ;;  %v2906_v58 = vld [vmem:[%s3531_s7 + $0xc0] sm:$0xe] }
  0xf9   : > { %v4475_v42 = vpop.permute.xlu0 %1418  ;;  %v2077_v52 = vsel %vm2055_vm6, %v2044_v24, %v4436_v63  ;;  %v2061_v59 = vsel %vm2055_vm6, %v2028_v20, %v4440_v43  ;;  %v2899_v24 = vld [vmem:[%s3531_s7 + $0x6c] sm:$0xe]  ;;  %s4894_s18 = scalar_lea.sflag [#allocation3], %s237_s8 }
  0xfa   : > { %1312 = vrot.lane.b32.xlu1 %v1271_v47, %s3439_s11  ;;  %v1385_v47 = vrot.slane %v2995_v4, 1  ;;  %v1782_v4 = vrot.slane %v1780_v1, 1  ;;  %v1778_v54 = vor.u32 %v1777_v16, %v1773_v49  ;;  %v2110_v30 = vsel %vm2088_vm7, %v2077_v52, %v4459_v55 }
  0xfb   : > { %1296 = vrot.lane.b32.xlu0 %v1175_v56, %s3439_s11  ;;  %v2094_v63 = vsel %vm2088_vm7, %v2061_v59, %v4463_v10 }
  0xfc   : > { %v4492_v7 = vpop.permute.xlu1 %1544  ;;  %v1387_v62 = vsel %vm851_vm0, %v1385_v47, %v1386_v31  ;;  %v1792_v47 = vshll.u32 %v4532_v2, 16  ;;  %v4553_v31 = vld [vmem:[%s3531_s7 + $0x74] ss:$0 sps:$4 sm:$0x11]   ;;  %v1783_v41 = vsel %vm578_vm1, %v1778_v54, %v1782_v4  ;;  %v1964_v4 = vsel %vm1956_vm3, %v3765_v32, %v4356_v44 }
  0xfd   : > { %v4497_v61 = vpop.permute.xlu0 %1528  ;;  %v2143_v16 = vsel %vm2121_vm8, %v2110_v30, %v4492_v7  ;;  %v1696_v43 = vshll.u32 %v4553_v31, 16 }
  0xfe   : > { %1314 = vrot.lane.b32.xlu1 %v1283_v57, %s3439_s11  ;;  %v4536_v57 = vcombine.low %v2858_v38, %v4522_v8  ;;  %v2127_v55 = vsel %vm2121_vm8, %v2094_v63, %v4497_v61  ;;  %v1980_v61 = vsel %vm1956_vm3, %v3760_v28, %v4349_v3  ;;  %v1997_v3 = vsel %vm1989_vm4, %v1964_v4, %v4383_v60 }
  0xff   : > { %1298 = vrot.lane.b32.xlu0 %v1187_v23, %s3439_s11  ;;  %v1787_v23 = vshll.u32 %v4519_v29, 16  ;;  %v1698_v44 = vrot.slane %v1696_v43, 1  ;;  %v1919_v60 = vrot.slane %v4506_v36, 1 }
 0x100   : > { %v4511_v12 = vpop.permute.xlu1 %1546  ;;  %v1691_v11 = vshll.u32 %v4536_v57, 16  ;;  %v1689_v49 = vshrl.u32 %v4536_v57, 16 }
 0x101   : > { %v4516_v56 = vpop.permute.xlu0 %1530 }
 0x102   : > { %1440 = vrot.lane.b32.xlu1 %v1408_v17, %s3440_s12  ;;  %v1681_v17 = vrot.slane %v1679_v9, 1  ;;  %v1686_v9 = vrot.slane %v1684_v14, 1  ;;  %v1794_v14 = vrot.slane %v1792_v47, 1  ;;  %v2907_v47 = vld [vmem:[%s3531_s7 + $0xcc] sm:$0xe] }
 0x103   : > { %1424 = vrot.lane.b32.xlu0 %v1384_v53, %s3440_s12  ;;  %v1785_v53 = vshrl.u32 %v4519_v29, 16  ;;  %v3051_v52 = vcombine.low %v2907_v47, %v4503_v22 }
 0x104   : > { %v1817_v5 = vpop.permute.xlu1 %1816 }
 0x105   : > { %v1801_v13 = vpop.permute.xlu0 %1800 }
 0x106   : > { %1442 = vrot.lane.b32.xlu1 %v1411_v35, %s3440_s12  ;;  %v1789_v35 = vrot.slane %v1787_v23, 1  ;;  %v2160_v10 = vsel %vm2154_vm9, %v2127_v55, %v1801_v13 }
 0x107   : > { %1426 = vrot.lane.b32.xlu0 %v1387_v62, %s3440_s12  ;;  %v1682_v62 = vor.u32 %v1681_v17, %v1677_v48  ;;  %v1693_v48 = vrot.slane %v1691_v11, 1  ;;  %v2898_v17 = vld [vmem:[%s3531_s7 + $0x60] sm:$0xe]  ;;  %s2778_s12 = sshll.u32 %s237_s8, 8 }
 0x108   : > { %v4559_v38 = vpop.permute.xlu1 %1818  ;;  %v1790_v18 = vor.u32 %v1789_v35, %v1785_v53  ;;  %v3042_v28 = vcombine.low %v2898_v17, %v4490_v33  ;;  %v3043_v35 = vcombine.low %v2899_v24, %v4522_v8  ;;  %v1922_v8 = vrot.slane %v4532_v2, 1  ;;  %s4766_s13 = scalar_lea.vmem [#allocation2], %s2778_s12 }
 0x109   : > { %v4566_v1 = vpop.permute.xlu0 %1802  ;;  %v1687_v13 = vsel %vm578_vm1, %v1682_v62, %v1686_v9  ;;  %v1694_v32 = vor.u32 %v1693_v48, %v1689_v49  ;;  %v1898_v49 = vrot.slane %v4553_v31, 1 }
 0x10a   : > { %1552 = vrot.lane.b32.xlu1 %v3018_v19, %s3441_s21  ;;  %v2176_v19 = vsel %vm2154_vm9, %v2143_v16, %v1817_v5  ;;  %v1795_v33 = vsel %vm578_vm1, %v1790_v18, %v1794_v14  ;;  %v1894_v36 = vrot.slane %v3042_v28, 1  ;;  %v1897_v62 = vrot.slane %v3043_v35, 1 }
 0x10b   : > { %1536 = vrot.lane.b32.xlu0 %v3010_v6, %s3441_s21  ;;  %v3050_v6 = vcombine.low %v2906_v58, %v4480_v37  ;;  %v2013_v37 = vsel %vm1989_vm4, %v1980_v61, %v4378_v0  ;;  %v2030_v0 = vsel %vm2022_vm5, %v1997_v3, %v4420_v40  ;;  %v1895_v40 = vrot.slane %v4525_v39, 1 }
 0x10c   : > { %v1945_v23 = vpop.permute.xlu1 %1944  ;;  %v1699_v39 = vsel %vm578_vm1, %v1694_v32, %v1698_v44  ;;  %v1899_v14 = vsel %vm851_vm0, %v1897_v62, %v1898_v49  ;;  %v4957_v44 = vld [vmem:[#allocation6_spill] sm:$0xff] }
 0x10d   : > { %v2209_v25 = vsel %vm2187_vm10, %v2176_v19, %v1945_v23  ;;  %v1929_v7 = vpop.permute.xlu0 %1928  ;;  %v1918_v11 = vrot.slane %v3050_v6, 1 }
 0x10e   : > { %v2193_v5 = vsel %vm2187_vm10, %v2160_v10, %v1929_v7  ;;  %1554 = vrot.lane.b32.xlu1 %v4519_v29, %s3441_s21  ;;  %3124 = vmatprep.mubr.msk.bf16.mxu1 %vm2240_vm11, %v2209_v25  ;;  %v2046_v29 = vsel %vm2022_vm5, %v2013_v37, %v4411_v27  ;;  %v2063_v27 = vsel %vm2055_vm6, %v2030_v0, %v4454_v45 }
 0x10f   : > { %1538 = vrot.lane.b32.xlu0 %v4536_v57, %s3441_s21  ;;  %3108 = vmatprep.mubr.msk.bf16.mxu0 %vm2240_vm11, %v2193_v5  ;;  %v2079_v57 = vsel %vm2055_vm6, %v2046_v29, %v4449_v21  ;;  %v2096_v21 = vsel %vm2088_vm7, %v2063_v27, %v4475_v42  ;;  %v1920_v22 = vsel %vm851_vm0, %v1918_v11, %v1919_v60  ;;  %v4956_v29 = vld [vmem:[#allocation5_spill] sm:$0xff]  ;;  %s2659_s21 = sshll.u32 %s4766_s13, 4  ;;  %s4886_s21 = int_to_ptr.vmem [resolvable:$true] %s2659_s21 }
 0x110   : > { %v4610_v53 = vpop.permute.xlu1 %795  ;;  %v2112_v54 = vsel %vm2088_vm7, %v2079_v57, %v4470_v26  ;;  %v2129_v45 = vsel %vm2121_vm8, %v2096_v21, %v4516_v56  ;;  %v1921_v56 = vrot.slane %v3051_v52, 1  ;;  %p3363_p1 = scmp.lt.s32.totalorder %s4886_s21, %s3361_s5 }
 0x111   : > { %v4617_v51 = vpop.permute.xlu0 %779  ;;  %v2145_v20 = vsel %vm2121_vm8, %v2112_v54, %v4511_v12  ;;  %v2162_v42 = vsel %vm2154_vm9, %v2129_v45, %v4566_v1  ;;  %v1896_v1 = vsel %vm851_vm0, %v1894_v36, %v1895_v40  ;;  %v1982_v32 = vsel %vm1956_vm3, %v4956_v29, %v4610_v53 }
 0x112   : > { %1824 = vrot.lane.b32.xlu1 %v1783_v41, %s3442_s26  ;;  %v2178_v26 = vsel %vm2154_vm9, %v2145_v20, %v4559_v38  ;;  %v1923_v63 = vsel %vm851_vm0, %v1921_v56, %v1922_v8  ;;  %v1966_v47 = vsel %vm1956_vm3, %v4957_v44, %v4617_v51 }
 0x113   : > { %1808 = vrot.lane.b32.xlu0 %v1687_v13, %s3442_s26 }
 0x114   : > { %v1947_v9 = vpop.permute.xlu1 %1946 }
 0x115   : > { %v2211_v12 = vsel %vm2187_vm10, %v2178_v26, %v1947_v9  ;;  %v1931_v59 = vpop.permute.xlu0 %1930  ;;  %v4958_v9 = vld [vmem:[#allocation7_spill] sm:$0xff] }
 0x116   : > { %v2195_v30 = vsel %vm2187_vm10, %v2162_v42, %v1931_v59  ;;  %1826 = vrot.lane.b32.xlu1 %v1795_v33, %s3442_s26  ;;  %3125 = vmatmul.mubr.msk.bf16.gmra.mrb[4].mxu1 %vm2240_vm11, %v2211_v12  ;;  %v4959_v42 = vld [vmem:[#allocation8_spill] sm:$0xff] }
 0x117   : > { %1810 = vrot.lane.b32.xlu0 %v1699_v39, %s3442_s26  ;;  %3109 = vmatmul.mubr.msk.bf16.gmra.mrb[4].mxu0 %vm2240_vm11, %v2195_v30  ;;  %s4884_s26 = scalar_lea.hbm %s4945_s4, %s3078_s14 }
 0x118   : > { %v798_v38 = vpop.permute.xlu1 %797 }
 0x119   : > { %v782_v58 = vpop.permute.xlu0 %781  ;;  %v1984_v39 = vsel %vm1956_vm3, %v4958_v9, %v798_v38 }
 0x11a   : > { %1952 = vrot.lane.b32.xlu1 %v1920_v22, %s3443_s29  ;;  %v1968_v12 = vsel %vm1956_vm3, %v4959_v42, %v782_v58 }
 0x11b   : > { %1936 = vrot.lane.b32.xlu0 %v1896_v1, %s3443_s29 }
 0x11c   : > { %v925_v16 = vpop.permute.xlu1 %924 }
 0x11d   : > { %v909_v43 = vpop.permute.xlu0 %908  ;;  %v2015_v0 = vsel %vm1989_vm4, %v1982_v32, %v925_v16 }
 0x11e   : > { %1954 = vrot.lane.b32.xlu1 %v1923_v63, %s3443_s29  ;;  %v1999_v57 = vsel %vm1989_vm4, %v1966_v47, %v909_v43 }
 0x11f   : > { %1938 = vrot.lane.b32.xlu0 %v1899_v14, %s3443_s29  ;;  %s3356_s29 = scalar_lea.vmem %s4886_s21, 4096 }
 0x120   : > { %v927_v2 = vpop.permute.xlu1 %926  ;;  %p3357_p12 = scmp.ne.s32.totalorder %s4886_s21, %s3356_s29  ;;  %p3364_p2 = scmp.lt.s32.totalorder %s3362_s6, %s3356_s29 }
 0x121   : > { %v911_v55 = vpop.permute.xlu0 %910  ;;  %v2017_v59 = vsel %vm1989_vm4, %v1984_v39, %v927_v2 }
 0x122   : > { %v2001_v30 = vsel %vm1989_vm4, %v1968_v12, %v911_v55  ;;  %p3358_p13 = pnand %p3357_p12, %p3511_p4  ;;  %p3365_p3 = por %p3364_p2, %p3363_p1 }
 0x124   : > { %v1037_v19 = vpop.permute.xlu1 %1036  ;;  %p3359_p0 = pneg %p3358_p13 }
 0x125   : > { %v1021_v23 = vpop.permute.xlu0 %1020  ;;  %v2048_v33 = vsel %vm2022_vm5, %v2015_v0, %v1037_v19 }
 0x126   : > { %v2032_v24 = vsel %vm2022_vm5, %v1999_v57, %v1021_v23  ;;  %p3366_p5 = pnand %p3365_p3, %p3359_p0 }
 0x128   : > { %v1039_v31 = vpop.permute.xlu1 %1038 }
 0x129   : > { %v1023_v41 = vpop.permute.xlu0 %1022  ;;  %v2050_v22 = vsel %vm2022_vm5, %v2017_v59, %v1039_v31 }
 0x12a   : > { %v2034_v8 = vsel %vm2022_vm5, %v2001_v30, %v1023_v41 }
 0x12c   : > { %v1309_v48 = vpop.permute.xlu1 %1308 }
 0x12d   : > { %v1293_v17 = vpop.permute.xlu0 %1292  ;;  %v2081_v27 = vsel %vm2055_vm6, %v2048_v33, %v1309_v48 }
 0x12e   : > { %v2065_v11 = vsel %vm2055_vm6, %v2032_v24, %v1293_v17 }
 0x130   : > { %v1311_v10 = vpop.permute.xlu1 %1310 }
 0x131   : > { %v1295_v25 = vpop.permute.xlu0 %1294  ;;  %v2083_v38 = vsel %vm2055_vm6, %v2050_v22, %v1311_v10 }
 0x132   : > { %v2067_v62 = vsel %vm2055_vm6, %v2034_v8, %v1295_v25 }
 0x134   : > { %v1437_v7 = vpop.permute.xlu1 %1436 }
 0x135   : > { %v1421_v18 = vpop.permute.xlu0 %1420  ;;  %v2114_v53 = vsel %vm2088_vm7, %v2081_v27, %v1437_v7 }
 0x136   : > { %v2098_v40 = vsel %vm2088_vm7, %v2065_v11, %v1421_v18 }
 0x138   : > { %v1439_v6 = vpop.permute.xlu1 %1438 }
 0x139   : > { %v1423_v61 = vpop.permute.xlu0 %1422  ;;  %v2116_v49 = vsel %vm2088_vm7, %v2083_v38, %v1439_v6 }
 0x13a   : > { %v2100_v58 = vsel %vm2088_vm7, %v2067_v62, %v1423_v61 }
 0x13c   : > { %v1549_v5 = vpop.permute.xlu1 %1548 }
 0x13d   : > { %v1533_v13 = vpop.permute.xlu0 %1532  ;;  %v2147_v51 = vsel %vm2121_vm8, %v2114_v53, %v1549_v5 }
 0x13e   : > { %v2131_v21 = vsel %vm2121_vm8, %v2098_v40, %v1533_v13 }
 0x140   : > { %v1551_v4 = vpop.permute.xlu1 %1550 }
 0x141   : > { %v1535_v37 = vpop.permute.xlu0 %1534  ;;  %v2149_v63 = vsel %vm2121_vm8, %v2116_v49, %v1551_v4 }
 0x142   : > { %v2133_v16 = vsel %vm2121_vm8, %v2100_v58, %v1535_v37 }
 0x144   : > { %v1821_v28 = vpop.permute.xlu1 %1820 }
 0x145   : > { %v1805_v3 = vpop.permute.xlu0 %1804  ;;  %v2180_v20 = vsel %vm2154_vm9, %v2147_v51, %v1821_v28 }
 0x146   : > { %v2164_v52 = vsel %vm2154_vm9, %v2131_v21, %v1805_v3 }
 0x148   : > { %v1823_v60 = vpop.permute.xlu1 %1822 }
 0x149   : > { %v1807_v54 = vpop.permute.xlu0 %1806  ;;  %v2182_v14 = vsel %vm2154_vm9, %v2149_v63, %v1823_v60 }
 0x14a   : > { %v2166_v2 = vsel %vm2154_vm9, %v2133_v16, %v1807_v54 }
 0x14c   : > { %v1949_v36 = vpop.permute.xlu1 %1948 }
 0x14d   : > { %v2213_v45 = vsel %vm2187_vm10, %v2180_v20, %v1949_v36  ;;  %v1933_v26 = vpop.permute.xlu0 %1932 }
 0x14e   : > { %v2197_v35 = vsel %vm2187_vm10, %v2164_v52, %v1933_v26  ;;  %3128 = vmatprep.mubr.msk.bf16.mxu1 %vm2240_vm11, %v2213_v45 }
 0x14f   : > { %3112 = vmatprep.mubr.msk.bf16.mxu0 %vm2240_vm11, %v2197_v35 }
 0x150   : > { %v800_v56 = vpop.permute.xlu1 %799 }
 0x151   : > { %v784_v1 = vpop.permute.xlu0 %783  ;;  %v1986_v24 = vsel %vm1956_vm3, %v4250_v46, %v800_v56 }
 0x152   : > { %v1970_v27 = vsel %vm1956_vm3, %v4259_v15, %v784_v1 }
 0x154   : > { %v1951_v43 = vpop.permute.xlu1 %1950 }
 0x155   : > { %v2215_v55 = vsel %vm2187_vm10, %v2182_v14, %v1951_v43  ;;  %v1935_v19 = vpop.permute.xlu0 %1934 }
 0x156   : > { %v2199_v23 = vsel %vm2187_vm10, %v2166_v2, %v1935_v19  ;;  %3129 = vmatmul.mubr.msk.bf16.gmra.mrb[8].mxu1 %vm2240_vm11, %v2215_v55  ;;  %v4743_v19 = vld [vmem:[%s4943_s2] ss:$0 sm:$0xff] }
 0x157   : > { %3113 = vmatmul.mubr.msk.bf16.gmra.mrb[8].mxu0 %vm2240_vm11, %v2199_v23  ;;  %v4749_v23 = vld [vmem:[%s4944_s3] ss:$0 sm:$0xff] }
 0x158   : > { %v802_v31 = vpop.permute.xlu1 %801 }
 0x159   : > { %v786_v41 = vpop.permute.xlu0 %785  ;;  %v1988_v36 = vsel %vm1956_vm3, %v4325_v50, %v802_v31 }
 0x15a   : > { %v1972_v15 = vsel %vm1956_vm3, %v4332_v34, %v786_v41 }
 0x15c   : > { %v929_v48 = vpop.permute.xlu1 %928 }
 0x15d   : > { %v913_v17 = vpop.permute.xlu0 %912  ;;  %v2019_v54 = vsel %vm1989_vm4, %v1986_v24, %v929_v48 }
 0x15e   : > { %v2003_v11 = vsel %vm1989_vm4, %v1970_v27, %v913_v17 }
 0x160   : > { %v931_v10 = vpop.permute.xlu1 %930 }
 0x161   : > { %v915_v25 = vpop.permute.xlu0 %914  ;;  %v2021_v45 = vsel %vm1989_vm4, %v1988_v36, %v931_v10 }
 0x162   : > { %v2005_v39 = vsel %vm1989_vm4, %v1972_v15, %v915_v25 }
 0x164   : > { %v1041_v7 = vpop.permute.xlu1 %1040 }
 0x165   : > { %v1025_v18 = vpop.permute.xlu0 %1024  ;;  %v2052_v53 = vsel %vm2022_vm5, %v2019_v54, %v1041_v7 }
 0x166   : > { %v2036_v51 = vsel %vm2022_vm5, %v2003_v11, %v1025_v18 }
 0x168   : > { %v1043_v6 = vpop.permute.xlu1 %1042 }
 0x169   : > { %v1027_v61 = vpop.permute.xlu0 %1026  ;;  %v2054_v35 = vsel %vm2022_vm5, %v2021_v45, %v1043_v6 }
 0x16a   : > { %v2038_v59 = vsel %vm2022_vm5, %v2005_v39, %v1027_v61 }
 0x16c   : > { %v1313_v5 = vpop.permute.xlu1 %1312 }
 0x16d   : > { %v1297_v13 = vpop.permute.xlu0 %1296  ;;  %v2085_v21 = vsel %vm2055_vm6, %v2052_v53, %v1313_v5 }
 0x16e   : > { %v2069_v46 = vsel %vm2055_vm6, %v2036_v51, %v1297_v13 }
 0x170   : > { %v1315_v4 = vpop.permute.xlu1 %1314 }
 0x171   : > { %v1299_v37 = vpop.permute.xlu0 %1298  ;;  %v2087_v30 = vsel %vm2055_vm6, %v2054_v35, %v1315_v4 }
 0x172   : > { %v2071_v8 = vsel %vm2055_vm6, %v2038_v59, %v1299_v37 }
 0x174   : > { %v1441_v28 = vpop.permute.xlu1 %1440 }
 0x175   : > { %v1425_v3 = vpop.permute.xlu0 %1424  ;;  %v2118_v52 = vsel %vm2088_vm7, %v2085_v21, %v1441_v28 }
 0x176   : > { %v2102_v26 = vsel %vm2088_vm7, %v2069_v46, %v1425_v3 }
 0x178   : > { %v1443_v29 = vpop.permute.xlu1 %1442 }
 0x179   : > { %v1427_v32 = vpop.permute.xlu0 %1426  ;;  %v2120_v38 = vsel %vm2088_vm7, %v2087_v30, %v1443_v29 }
 0x17a   : > { %v2104_v62 = vsel %vm2088_vm7, %v2071_v8, %v1427_v32 }
 0x17c   : > { %v1553_v44 = vpop.permute.xlu1 %1552 }
 0x17d   : > { %v1537_v47 = vpop.permute.xlu0 %1536  ;;  %v2151_v9 = vsel %vm2121_vm8, %v2118_v52, %v1553_v44 }
 0x17e   : > { %v2135_v42 = vsel %vm2121_vm8, %v2102_v26, %v1537_v47 }
 0x180   : > { %v1555_v0 = vpop.permute.xlu1 %1554 }
 0x181   : > { %v1539_v57 = vpop.permute.xlu0 %1538  ;;  %v2153_v49 = vsel %vm2121_vm8, %v2120_v38, %v1555_v0 }
 0x182   : > { %v2137_v58 = vsel %vm2121_vm8, %v2104_v62, %v1539_v57 }
 0x184   : > { %v1825_v33 = vpop.permute.xlu1 %1824 }
 0x185   : > { %v1809_v60 = vpop.permute.xlu0 %1808  ;;  %v2184_v50 = vsel %vm2154_vm9, %v2151_v9, %v1825_v33 }
 0x186   : > { %v2168_v34 = vsel %vm2154_vm9, %v2135_v42, %v1809_v60 }
 0x188   : > { %v1827_v40 = vpop.permute.xlu1 %1826 }
 0x189   : > { %v1811_v20 = vpop.permute.xlu0 %1810  ;;  %v2186_v63 = vsel %vm2154_vm9, %v2153_v49, %v1827_v40 }
 0x18a   : > { %v2170_v14 = vsel %vm2154_vm9, %v2137_v58, %v1811_v20 }
 0x18c   : > { %v1953_v12 = vpop.permute.xlu1 %1952 }
 0x18d   : > { %v2217_v22 = vsel %vm2187_vm10, %v2184_v50, %v1953_v12  ;;  %v1937_v56 = vpop.permute.xlu0 %1936 }
 0x18e   : > { %v2201_v1 = vsel %vm2187_vm10, %v2168_v34, %v1937_v56  ;;  %3132 = vmatprep.mubr.msk.bf16.mxu1 %vm2240_vm11, %v2217_v22 }
 0x18f   : > { %3116 = vmatprep.mubr.msk.bf16.mxu0 %vm2240_vm11, %v2201_v1 }
 0x190   : > { %v1955_v16 = vpop.permute.xlu1 %1954 }
 0x191   : > { %v2219_v43 = vsel %vm2187_vm10, %v2186_v63, %v1955_v16  ;;  %v1939_v2 = vpop.permute.xlu0 %1938 }
 0x192   : > { %v2203_v55 = vsel %vm2187_vm10, %v2170_v14, %v1939_v2  ;;  %3133 = vmatmul.mubr.msk.bf16.gmra.mrb[12].mxu1 %vm2240_vm11, %v2219_v43 }
 0x193   : > { %3117 = vmatmul.mubr.msk.bf16.gmra.mrb[12].mxu0 %vm2240_vm11, %v2203_v55 }
 0x1a9   : > { %v3122_v31 = vpop.f32.mrb[0].mxu1 }
 0x1aa   : > { %v3106_v41 = vpop.f32.mrb[0].mxu0  ;;  %v2463_v48 = vmul.f32 %v3122_v31, %v4743_v19  ;;  %v2375_v17 = vpop.f32.mrb[1].mxu1 }
 0x1ab   : > { %v2447_v10 = vmul.f32 %v3106_v41, %v4743_v19  ;;  %v2311_v25 = vpop.f32.mrb[1].mxu0  ;;  %v2461_v7 = vmul.f32 %v4743_v19, %v2375_v17  ;;  %v3123_v18 = vpop.f32.mrb[2].mxu1 }
 0x1ac   : > { %v2502_v6 = vadd.f32 %v4749_v23, %v2463_v48  ;;  %v2445_v61 = vmul.f32 %v4743_v19, %v2311_v25  ;;  %v3107_v5 = vpop.f32.mrb[2].mxu0  ;;  %v2464_v13 = vmul.f32 %v3123_v18, %v4743_v19  ;;  %v2378_v4 = vpop.f32.mrb[3].mxu1 }
 0x1ad   : > { %v2486_v37 = vadd.f32 %v4749_v23, %v2447_v10  ;;  %v2500_v28 = vadd.f32 %v4749_v23, %v2461_v7  ;;  %v2448_v3 = vmul.f32 %v3107_v5, %v4743_v19  ;;  %v2314_v29 = vpop.f32.mrb[3].mxu0  ;;  %v2462_v32 = vmul.f32 %v4743_v19, %v2378_v4 }
 0x1ae   : > { %vm2534_vm12 = vcmp.ge.f32.partialorder %v2502_v6, 0.0  ;;  %v2566_v44 = vmul.f32 0.1, %v2502_v6  ;;  %v2484_v47 = vadd.f32 %v4749_v23, %v2445_v61  ;;  %v2503_v0 = vadd.f32 %v4749_v23, %v2464_v13 }
 0x1af   : > { %vm2518_vm13 = vcmp.ge.f32.partialorder %v2486_v37, 0.0  ;;  %v2550_v57 = vmul.f32 0.1, %v2486_v37  ;;  %vm2532_vm14 = vcmp.ge.f32.partialorder %v2500_v28, 0.0  ;;  %v2564_v33 = vmul.f32 0.1, %v2500_v28 }
 0x1b0   : > { %v2598_v60 = vsel %vm2534_vm12, %v2502_v6, %v2566_v44  ;;  %vm2516_vm15 = vcmp.ge.f32.partialorder %v2484_v47, 0.0  ;;  %v2548_v24 = vmul.f32 0.1, %v2484_v47  ;;  %v2487_v27 = vadd.f32 %v4749_v23, %v2448_v3 }
 0x1b1   : > { %v2582_v54 = vsel %vm2518_vm13, %v2486_v37, %v2550_v57  ;;  %2630 = vst.msk [vmem:[%s4766_s13 + $0x90] sm:$0xff] %vm2187_vm10, %v2598_v60  ;;  %v2596_v11 = vsel %vm2532_vm14, %v2500_v28, %v2564_v33  ;;  %vm2535_vm0 = vcmp.ge.f32.partialorder %v2503_v0, 0.0  ;;  %v2567_v53 = vmul.f32 0.1, %v2503_v0 }
 0x1b2   : > { %2614 = vst.msk [vmem:[%s4766_s13 + $0x10] sm:$0xff] %vm2187_vm10, %v2582_v54  ;;  %v2580_v40 = vsel %vm2516_vm15, %v2484_v47, %v2548_v24  ;;  %2628 = vst.msk [vmem:[%s4766_s13 + $0x80] sm:$0xff] %vm2187_vm10, %v2596_v11  ;;  %vm2519_vm1 = vcmp.ge.f32.partialorder %v2487_v27, 0.0  ;;  %v2551_v51 = vmul.f32 0.1, %v2487_v27  ;;  %v2446_v21 = vmul.f32 %v4743_v19, %v2314_v29 }
 0x1b3   : > { %2612 = vst.msk [vmem:[%s4766_s13] sm:$0xff] %vm2187_vm10, %v2580_v40  ;;  %v2599_v20 = vsel %vm2535_vm0, %v2503_v0, %v2567_v53  ;;  %v2501_v36 = vadd.f32 %v4749_v23, %v2462_v32 }
 0x1b4   : > { %v2583_v46 = vsel %vm2519_vm1, %v2487_v27, %v2551_v51  ;;  %2631 = vst.msk [vmem:[%s4766_s13 + $0x98] sm:$0xff] %vm2187_vm10, %v2599_v20  ;;  %v2485_v52 = vadd.f32 %v4749_v23, %v2446_v21 }
 0x1b5   : > { %2615 = vst.msk [vmem:[%s4766_s13 + $0x18] sm:$0xff] %vm2187_vm10, %v2583_v46  ;;  %vm2533_vm2 = vcmp.ge.f32.partialorder %v2501_v36, 0.0  ;;  %v2565_v15 = vmul.f32 0.1, %v2501_v36 }
 0x1b6   : > { %vm2517_vm3 = vcmp.ge.f32.partialorder %v2485_v52, 0.0  ;;  %v2549_v45 = vmul.f32 0.1, %v2485_v52 }
 0x1b7   : > { %v2597_v26 = vsel %vm2533_vm2, %v2501_v36, %v2565_v15 }
 0x1b8   : > { %v2581_v9 = vsel %vm2517_vm3, %v2485_v52, %v2549_v45  ;;  %2629 = vst.msk [vmem:[%s4766_s13 + $0x88] sm:$0xff] %vm2187_vm10, %v2597_v26 }
 0x1b9   : > { %2613 = vst.msk [vmem:[%s4766_s13 + $0x8] sm:$0xff] %vm2187_vm10, %v2581_v9 }
 0x1e9   : > { %v3126_v39 = vpop.f32.mrb[4].mxu1 }
 0x1ea   : > { %v3110_v35 = vpop.f32.mrb[4].mxu0  ;;  %v2467_v42 = vmul.f32 %v3126_v39, %v4743_v19  ;;  %v2391_v50 = vpop.f32.mrb[5].mxu1 }
 0x1eb   : > { %v2451_v12 = vmul.f32 %v3110_v35, %v4743_v19  ;;  %v2327_v59 = vpop.f32.mrb[5].mxu0  ;;  %v2465_v30 = vmul.f32 %v4743_v19, %v2391_v50  ;;  %v3127_v34 = vpop.f32.mrb[6].mxu1 }
 0x1ec   : > { %v2506_v22 = vadd.f32 %v4749_v23, %v2467_v42  ;;  %v2449_v56 = vmul.f32 %v4743_v19, %v2327_v59  ;;  %v3111_v8 = vpop.f32.mrb[6].mxu0  ;;  %v2468_v38 = vmul.f32 %v3127_v34, %v4743_v19  ;;  %v2394_v1 = vpop.f32.mrb[7].mxu1 }
 0x1ed   : > { %v2490_v62 = vadd.f32 %v4749_v23, %v2451_v12  ;;  %v2504_v49 = vadd.f32 %v4749_v23, %v2465_v30  ;;  %v2452_v58 = vmul.f32 %v3111_v8, %v4743_v19  ;;  %v2330_v63 = vpop.f32.mrb[7].mxu0  ;;  %v2466_v16 = vmul.f32 %v4743_v19, %v2394_v1 }
 0x1ee   : > { %vm2538_vm4 = vcmp.ge.f32.partialorder %v2506_v22, 0.0  ;;  %v2570_v14 = vmul.f32 0.1, %v2506_v22  ;;  %v2488_v43 = vadd.f32 %v4749_v23, %v2449_v56  ;;  %v2507_v2 = vadd.f32 %v4749_v23, %v2468_v38 }
 0x1ef   : > { %vm2522_vm5 = vcmp.ge.f32.partialorder %v2490_v62, 0.0  ;;  %v2554_v55 = vmul.f32 0.1, %v2490_v62  ;;  %vm2536_vm6 = vcmp.ge.f32.partialorder %v2504_v49, 0.0  ;;  %v2568_v31 = vmul.f32 0.1, %v2504_v49 }
 0x1f0   : > { %v2602_v41 = vsel %vm2538_vm4, %v2506_v22, %v2570_v14  ;;  %vm2520_vm7 = vcmp.ge.f32.partialorder %v2488_v43, 0.0  ;;  %v2552_v48 = vmul.f32 0.1, %v2488_v43  ;;  %v2491_v17 = vadd.f32 %v4749_v23, %v2452_v58 }
 0x1f1   : > { %v2586_v10 = vsel %vm2522_vm5, %v2490_v62, %v2554_v55  ;;  %2634 = vst.msk [vmem:[%s4766_s13 + $0xb0] sm:$0xff] %vm2187_vm10, %v2602_v41  ;;  %v2600_v25 = vsel %vm2536_vm6, %v2504_v49, %v2568_v31  ;;  %vm2539_vm8 = vcmp.ge.f32.partialorder %v2507_v2, 0.0  ;;  %v2571_v7 = vmul.f32 0.1, %v2507_v2 }
 0x1f2   : > { %2618 = vst.msk [vmem:[%s4766_s13 + $0x30] sm:$0xff] %vm2187_vm10, %v2586_v10  ;;  %v2584_v18 = vsel %vm2520_vm7, %v2488_v43, %v2552_v48  ;;  %2632 = vst.msk [vmem:[%s4766_s13 + $0xa0] sm:$0xff] %vm2187_vm10, %v2600_v25  ;;  %vm2523_vm9 = vcmp.ge.f32.partialorder %v2491_v17, 0.0  ;;  %v2555_v6 = vmul.f32 0.1, %v2491_v17  ;;  %v2450_v61 = vmul.f32 %v4743_v19, %v2330_v63 }
 0x1f3   : > { %2616 = vst.msk [vmem:[%s4766_s13 + $0x20] sm:$0xff] %vm2187_vm10, %v2584_v18  ;;  %v2603_v5 = vsel %vm2539_vm8, %v2507_v2, %v2571_v7  ;;  %v2505_v13 = vadd.f32 %v4749_v23, %v2466_v16 }
 0x1f4   : > { %v2587_v4 = vsel %vm2523_vm9, %v2491_v17, %v2555_v6  ;;  %2635 = vst.msk [vmem:[%s4766_s13 + $0xb8] sm:$0xff] %vm2187_vm10, %v2603_v5  ;;  %v2489_v37 = vadd.f32 %v4749_v23, %v2450_v61 }
 0x1f5   : > { %2619 = vst.msk [vmem:[%s4766_s13 + $0x38] sm:$0xff] %vm2187_vm10, %v2587_v4  ;;  %vm2537_vm11 = vcmp.ge.f32.partialorder %v2505_v13, 0.0  ;;  %v2569_v28 = vmul.f32 0.1, %v2505_v13 }
 0x1f6   : > { %vm2521_vm12 = vcmp.ge.f32.partialorder %v2489_v37, 0.0  ;;  %v2553_v3 = vmul.f32 0.1, %v2489_v37 }
 0x1f7   : > { %v2601_v29 = vsel %vm2537_vm11, %v2505_v13, %v2569_v28 }
 0x1f8   : > { %v2585_v32 = vsel %vm2521_vm12, %v2489_v37, %v2553_v3  ;;  %2633 = vst.msk [vmem:[%s4766_s13 + $0xa8] sm:$0xff] %vm2187_vm10, %v2601_v29 }
 0x1f9   : > { %2617 = vst.msk [vmem:[%s4766_s13 + $0x28] sm:$0xff] %vm2187_vm10, %v2585_v32 }
 0x229   : > { %v3130_v44 = vpop.f32.mrb[8].mxu1 }
 0x22a   : > { %v3114_v47 = vpop.f32.mrb[8].mxu0  ;;  %v2471_v0 = vmul.f32 %v3130_v44, %v4743_v19  ;;  %v2407_v57 = vpop.f32.mrb[9].mxu1 }
 0x22b   : > { %v2455_v33 = vmul.f32 %v3114_v47, %v4743_v19  ;;  %v2343_v60 = vpop.f32.mrb[9].mxu0  ;;  %v2469_v24 = vmul.f32 %v4743_v19, %v2407_v57  ;;  %v3131_v27 = vpop.f32.mrb[10].mxu1 }
 0x22c   : > { %v2510_v54 = vadd.f32 %v4749_v23, %v2471_v0  ;;  %v2453_v11 = vmul.f32 %v4743_v19, %v2343_v60  ;;  %v3115_v53 = vpop.f32.mrb[10].mxu0  ;;  %v2472_v40 = vmul.f32 %v3131_v27, %v4743_v19  ;;  %v2410_v51 = vpop.f32.mrb[11].mxu1 }
 0x22d   : > { %v2494_v21 = vadd.f32 %v4749_v23, %v2455_v33  ;;  %v2508_v20 = vadd.f32 %v4749_v23, %v2469_v24  ;;  %v2456_v36 = vmul.f32 %v3115_v53, %v4743_v19  ;;  %v2346_v46 = vpop.f32.mrb[11].mxu0  ;;  %v2470_v52 = vmul.f32 %v4743_v19, %v2410_v51 }
 0x22e   : > { %vm2542_vm13 = vcmp.ge.f32.partialorder %v2510_v54, 0.0  ;;  %v2574_v15 = vmul.f32 0.1, %v2510_v54  ;;  %v2492_v45 = vadd.f32 %v4749_v23, %v2453_v11  ;;  %v2511_v26 = vadd.f32 %v4749_v23, %v2472_v40 }
 0x22f   : > { %vm2526_vm14 = vcmp.ge.f32.partialorder %v2494_v21, 0.0  ;;  %v2558_v9 = vmul.f32 0.1, %v2494_v21  ;;  %vm2540_vm15 = vcmp.ge.f32.partialorder %v2508_v20, 0.0  ;;  %v2572_v39 = vmul.f32 0.1, %v2508_v20 }
 0x230   : > { %v2606_v35 = vsel %vm2542_vm13, %v2510_v54, %v2574_v15  ;;  %vm2524_vm0 = vcmp.ge.f32.partialorder %v2492_v45, 0.0  ;;  %v2556_v42 = vmul.f32 0.1, %v2492_v45  ;;  %v2495_v50 = vadd.f32 %v4749_v23, %v2456_v36 }
 0x231   : > { %v2590_v12 = vsel %vm2526_vm14, %v2494_v21, %v2558_v9  ;;  %2638 = vst.msk [vmem:[%s4766_s13 + $0xd0] sm:$0xff] %vm2187_vm10, %v2606_v35  ;;  %v2604_v59 = vsel %vm2540_vm15, %v2508_v20, %v2572_v39  ;;  %vm2543_vm1 = vcmp.ge.f32.partialorder %v2511_v26, 0.0  ;;  %v2575_v30 = vmul.f32 0.1, %v2511_v26 }
 0x232   : > { %2622 = vst.msk [vmem:[%s4766_s13 + $0x50] sm:$0xff] %vm2187_vm10, %v2590_v12  ;;  %v2588_v34 = vsel %vm2524_vm0, %v2492_v45, %v2556_v42  ;;  %2636 = vst.msk [vmem:[%s4766_s13 + $0xc0] sm:$0xff] %vm2187_vm10, %v2604_v59  ;;  %vm2527_vm2 = vcmp.ge.f32.partialorder %v2495_v50, 0.0  ;;  %v2559_v22 = vmul.f32 0.1, %v2495_v50  ;;  %v2454_v56 = vmul.f32 %v4743_v19, %v2346_v46 }
 0x233   : > { %2620 = vst.msk [vmem:[%s4766_s13 + $0x40] sm:$0xff] %vm2187_vm10, %v2588_v34  ;;  %v2607_v8 = vsel %vm2543_vm1, %v2511_v26, %v2575_v30  ;;  %v2509_v38 = vadd.f32 %v4749_v23, %v2470_v52 }
 0x234   : > { %v2591_v1 = vsel %vm2527_vm2, %v2495_v50, %v2559_v22  ;;  %2639 = vst.msk [vmem:[%s4766_s13 + $0xd8] sm:$0xff] %vm2187_vm10, %v2607_v8  ;;  %v2493_v62 = vadd.f32 %v4749_v23, %v2454_v56 }
 0x235   : > { %2623 = vst.msk [vmem:[%s4766_s13 + $0x58] sm:$0xff] %vm2187_vm10, %v2591_v1  ;;  %vm2541_vm3 = vcmp.ge.f32.partialorder %v2509_v38, 0.0  ;;  %v2573_v49 = vmul.f32 0.1, %v2509_v38 }
 0x236   : > { %vm2525_vm4 = vcmp.ge.f32.partialorder %v2493_v62, 0.0  ;;  %v2557_v58 = vmul.f32 0.1, %v2493_v62 }
 0x237   : > { %v2605_v63 = vsel %vm2541_vm3, %v2509_v38, %v2573_v49 }
 0x238   : > { %v2589_v16 = vsel %vm2525_vm4, %v2493_v62, %v2557_v58  ;;  %2637 = vst.msk [vmem:[%s4766_s13 + $0xc8] sm:$0xff] %vm2187_vm10, %v2605_v63 }
 0x239   : > { %2621 = vst.msk [vmem:[%s4766_s13 + $0x48] sm:$0xff] %vm2187_vm10, %v2589_v16 }
 0x265   : > { %v3134_v14 = vpop.f32.mrb[12].mxu1 }
 0x266   : > { %v3118_v43 = vpop.f32.mrb[12].mxu0  ;;  %v2475_v2 = vmul.f32 %v3134_v14, %v4743_v19  ;;  %v2423_v55 = vpop.f32.mrb[13].mxu1 }
 0x267   : > { %v2459_v31 = vmul.f32 %v3118_v43, %v4743_v19  ;;  %v2359_v41 = vpop.f32.mrb[13].mxu0  ;;  %v2473_v48 = vmul.f32 %v4743_v19, %v2423_v55  ;;  %v3135_v17 = vpop.f32.mrb[14].mxu1 }
 0x268   : > { %v2514_v10 = vadd.f32 %v4749_v23, %v2475_v2  ;;  %v2457_v25 = vmul.f32 %v4743_v19, %v2359_v41  ;;  %v3119_v7 = vpop.f32.mrb[14].mxu0  ;;  %v2476_v18 = vmul.f32 %v3135_v17, %v4743_v19  ;;  %v2426_v6 = vpop.f32.mrb[15].mxu1 }
 0x269   : > { %v2498_v61 = vadd.f32 %v4749_v23, %v2459_v31  ;;  %v2512_v5 = vadd.f32 %v4749_v23, %v2473_v48  ;;  %v2460_v13 = vmul.f32 %v3119_v7, %v4743_v19  ;;  %v2362_v4 = vpop.f32.mrb[15].mxu0  ;;  %v2474_v37 = vmul.f32 %v4743_v19, %v2426_v6 }
 0x26a   : > { %vm2546_vm5 = vcmp.ge.f32.partialorder %v2514_v10, 0.0  ;;  %v2578_v28 = vmul.f32 0.1, %v2514_v10  ;;  %v2496_v3 = vadd.f32 %v4749_v23, %v2457_v25  ;;  %v2515_v29 = vadd.f32 %v4749_v23, %v2476_v18 }
 0x26b   : > { %vm2530_vm6 = vcmp.ge.f32.partialorder %v2498_v61, 0.0  ;;  %v2562_v32 = vmul.f32 0.1, %v2498_v61  ;;  %vm2544_vm7 = vcmp.ge.f32.partialorder %v2512_v5, 0.0  ;;  %v2576_v44 = vmul.f32 0.1, %v2512_v5 }
 0x26c   : > { %v2610_v47 = vsel %vm2546_vm5, %v2514_v10, %v2578_v28  ;;  %vm2528_vm8 = vcmp.ge.f32.partialorder %v2496_v3, 0.0  ;;  %v2560_v0 = vmul.f32 0.1, %v2496_v3  ;;  %v2499_v57 = vadd.f32 %v4749_v23, %v2460_v13 }
 0x26d   : > { %v2594_v33 = vsel %vm2530_vm6, %v2498_v61, %v2562_v32  ;;  %2642 = vst.msk [vmem:[%s4766_s13 + $0xf0] sm:$0xff] %vm2187_vm10, %v2610_v47  ;;  %v2608_v60 = vsel %vm2544_vm7, %v2512_v5, %v2576_v44  ;;  %vm2547_vm9 = vcmp.ge.f32.partialorder %v2515_v29, 0.0  ;;  %v2579_v24 = vmul.f32 0.1, %v2515_v29 }
 0x26e   : > { %2626 = vst.msk [vmem:[%s4766_s13 + $0x70] sm:$0xff] %vm2187_vm10, %v2594_v33  ;;  %v2592_v27 = vsel %vm2528_vm8, %v2496_v3, %v2560_v0  ;;  %2640 = vst.msk [vmem:[%s4766_s13 + $0xe0] sm:$0xff] %vm2187_vm10, %v2608_v60  ;;  %vm2531_vm11 = vcmp.ge.f32.partialorder %v2499_v57, 0.0  ;;  %v2563_v54 = vmul.f32 0.1, %v2499_v57  ;;  %v2458_v11 = vmul.f32 %v4743_v19, %v2362_v4 }
 0x26f   : > { %2624 = vst.msk [vmem:[%s4766_s13 + $0x60] sm:$0xff] %vm2187_vm10, %v2592_v27  ;;  %v2611_v53 = vsel %vm2547_vm9, %v2515_v29, %v2579_v24  ;;  %v2513_v40 = vadd.f32 %v4749_v23, %v2474_v37 }
 0x270   : > { %v2595_v51 = vsel %vm2531_vm11, %v2499_v57, %v2563_v54  ;;  %2643 = vst.msk [vmem:[%s4766_s13 + $0xf8] sm:$0xff] %vm2187_vm10, %v2611_v53  ;;  %v2497_v21 = vadd.f32 %v4749_v23, %v2458_v11 }
 0x271   : > { %2627 = vst.msk [vmem:[%s4766_s13 + $0x78] sm:$0xff] %vm2187_vm10, %v2595_v51  ;;  %vm2545_vm12 = vcmp.ge.f32.partialorder %v2513_v40, 0.0  ;;  %v2577_v19 = vmul.f32 0.1, %v2513_v40 }
 0x272   : > { %vm2529_vm13 = vcmp.ge.f32.partialorder %v2497_v21, 0.0  ;;  %v2561_v20 = vmul.f32 0.1, %v2497_v21 }
 0x273   : > { %v2609_v36 = vsel %vm2545_vm12, %v2513_v40, %v2577_v19 }
 0x274   : > { %v2593_v23 = vsel %vm2529_vm13, %v2497_v21, %v2561_v20  ;;  %2641 = vst.msk [vmem:[%s4766_s13 + $0xe8] sm:$0xff] %vm2187_vm10, %v2609_v36 }
 0x275   : > { %2625 = vst.msk [vmem:[%s4766_s13 + $0x68] sm:$0xff] %vm2187_vm10, %v2593_v23 }
 0x276   : > { %3369 = shalt.err (!%p3366_p5)
}
 0x277   : > { %s3370_s7 = scalar_lea.hbm %s4884_s26, 4096  ;;  %s3374_s11 = scalar_lea.hbm %s4945_s4, 8192 }
 0x278   : > { %p3371_p6 = scmp.ne.s32.totalorder %s4884_s26, %s3370_s7  ;;  %p3375_p10 = scmp.lt.u32.totalorder %s4884_s26, %s4945_s4 }
 0x279   : > { %p3376_p11 = scmp.lt.u32.totalorder %s3374_s11, %s3370_s7  ;;  %p3378_p13 = scmp.lt.u32.totalorder %s3370_s7, %s4884_s26 }
 0x27a   : > { %p3372_p7 = pnand %p3371_p6, %p3511_p4 }
 0x27b   : > { %p3377_p12 = por %p3376_p11, %p3375_p10 }
 0x27c   : > { %p3373_p9 = pneg %p3372_p7 }
 0x27d   : > { %p3379_p0 = por %p3378_p13, %p3377_p12 }
 0x27f   : > { %p3380_p1 = pnand %p3379_p0, %p3373_p9 }
 0x281   : > { %3383 = shalt.err (!%p3380_p1)
}
 0x282   : > { %s3445_s14 = smov 128  }
 0x283   : > { %3145 = dma.vmem_to_hbm [thread:$0]  (%p3511_p4), %s4886_s21, 4096, %s4884_s26, %s4894_s18, %s3445_s14, %s3445_s14, %s3437_s9  }
 0x284 PF: > { %p3151_p2 = scmp.ge.s32.totalorder %s3434_s20, 2  ;;  %s2674_s22 = sand.u32 1, %s3414_s15  }
 0x285   : > { %s2675_s24 = scalar_lea.sflag [#allocation3], %s2674_s22 }
 0x286   : > { %p3148_p3 = pnand %p3151_p2, %p3518_p8 }
 0x288   : > { %3409 = dma.done.wait (!%p3148_p3), %s2675_s24, 4096  }
 0x289   : > { %3411 = vsyncadd (!%p3148_p3), %s2675_s24, 4294963200  ;;  %s17_s20 = sadd.s32 1, %s3434_s20   ;;  %s4960_s15 = smov %s3418_s16 }
 0x28a   : > { %p14_p5 = scmp.ge.s32.totalorder %s17_s20, 4   ;;  %s4961_s16 = smov %s3422_s17 }
 0x28b   : > { %s4962_s17 = smov %s3524_s28  ;;  %s4963_s18 = smov %s3430_s19 }
 0x28c   : > { %s4964_s19 = smov %s4966_s23  ;;  %16 = sbr.rel (!%p14_p5) target bundleno = 4 (0x4), region = 82 }
 0x293   :  { %2680 = vsyncpa [#allocation3], 1 }
 0x294   :  { %2682 = vsyncpa [#allocation3 + $0x1], 1 }

</bundles_post_ra>
